<compile_context>
chip_gen: v7x
topology: tpu7x:2x2x1
jax: 0.10.0
libtpu: 0.0.40
codegen_flags: <defaults>
</compile_context>

<pallas_src>
import jax
import jax.numpy as jnp
from jax.experimental import pallas as pl
from jax.experimental.pallas import tpu as pltpu

EPS = 1e-5


def bn_add_relu_kernel(x_ref, y_ref, gamma_ref, beta_ref, o_ref):
    # x_ref, y_ref, o_ref: (N, Cb, HW) f32 ; gamma_ref, beta_ref: (1, Cb, 1) f32
    x = x_ref[...]
    n, _, hw = x.shape
    inv_cnt = 1.0 / (n * hw)

    # Per-channel batch statistics (centered formulation = numerically safe).
    s = jnp.sum(x, axis=2, keepdims=True)                 # (N, Cb, 1) lane reduce
    mean = jnp.sum(s, axis=0, keepdims=True) * inv_cnt    # (1, Cb, 1)
    d = x - mean
    sq = jnp.sum(d * d, axis=2, keepdims=True)            # (N, Cb, 1)
    var = jnp.sum(sq, axis=0, keepdims=True) * inv_cnt    # biased variance

    # Fold BN into a single per-channel scale/shift.
    scale = gamma_ref[...] * jax.lax.rsqrt(var + EPS)     # (1, Cb, 1)
    shift = beta_ref[...] - mean * scale                  # (1, Cb, 1)

    o_ref[...] = jnp.maximum(x * scale + shift + y_ref[...], 0.0)


def _pick_channel_block(C, N, HW, itemsize=4, target_bytes=2 << 20):
    """Largest multiple-of-8 divisor of C whose (N, Cb, HW) input block stays
    under target_bytes (falls back to the smallest legal block)."""
    if C % 8 != 0:
        return C  # full-dim block is always a legal BlockSpec
    cands = [d for d in range(8, C + 1, 8) if C % d == 0]
    fitting = [d for d in cands if N * d * HW * itemsize <= target_bytes]
    return max(fitting) if fitting else min(cands)


def batchnorm_add_relu(x_nchw, y_nchw, gamma, beta):
    N, C, H, W = x_nchw.shape
    HW = H * W

    # Free reshapes -- data stays in its NCHW-contiguous HBM layout.
    x3 = x_nchw.reshape(N, C, HW)
    y3 = y_nchw.reshape(N, C, HW)
    g3 = gamma.reshape(1, C, 1).astype(x3.dtype)
    b3 = beta.reshape(1, C, 1).astype(x3.dtype)

    itemsize = x3.dtype.itemsize
    Cb = _pick_channel_block(C, N, HW, itemsize=itemsize)
    grid = (C // Cb,)
    # NOTE: for extremely large N*H*W (where even an 8-channel block would not
    # fit VMEM) this should switch to a two-pass stats+normalize pipeline with
    # row tiling; not needed for ResNet-scale activations.

    elems = N * C * HW
    cost = pl.CostEstimate(
        flops=8 * elems,              # sub, sq, reduce-adds, fma, add, max
        transcendentals=C,            # one rsqrt per channel
        bytes_accessed=3 * elems * itemsize,  # read x, read y, write out
    )

    out3 = pl.pallas_call(
        bn_add_relu_kernel,
        out_shape=jax.ShapeDtypeStruct((N, C, HW), x3.dtype),
        grid=grid,
        in_specs=[
            pl.BlockSpec((N, Cb, HW), lambda c: (0, c, 0)),
            pl.BlockSpec((N, Cb, HW), lambda c: (0, c, 0)),
            pl.BlockSpec((1, Cb, 1), lambda c: (0, c, 0)),
            pl.BlockSpec((1, Cb, 1), lambda c: (0, c, 0)),
        ],
        out_specs=pl.BlockSpec((N, Cb, HW), lambda c: (0, c, 0)),
        compiler_params=pltpu.CompilerParams(
            dimension_semantics=("parallel",),   # channel blocks independent
            vmem_limit_bytes=48 << 20,           # headroom under v7x 64 MiB
        ),
        cost_estimate=cost,
    )(x3, y3, g3, b3)

    return out3.reshape(N, C, H, W)


if __name__ == "__main__":
    # Shapes from the original module spec: BatchNorm2d(128) on (1,128,28,28).
    N, C, H, W = 1, 128, 28, 28
    key = jax.random.PRNGKey(0)
    k1, k2, k3, k4 = jax.random.split(key, 4)

    x22 = jax.random.normal(k1, (N, C, H, W), dtype=jnp.float32)
    x25 = jax.random.normal(k2, (N, C, H, W), dtype=jnp.float32)
    gamma = 1.0 + 0.1 * jax.random.normal(k3, (C,), dtype=jnp.float32)
    beta = 0.1 * jax.random.normal(k4, (C,), dtype=jnp.float32)

    out = batchnorm_add_relu(x22, x25, gamma, beta)
    jax.block_until_ready(out)

    # Pure-JAX reference (training-mode BatchNorm, biased variance).
    mean = jnp.mean(x22, axis=(0, 2, 3), keepdims=True)
    var = jnp.mean((x22 - mean) ** 2, axis=(0, 2, 3), keepdims=True)
    xn = (x22 - mean) * jax.lax.rsqrt(var + EPS)
    ref = jnp.maximum(
        xn * gamma.reshape(1, C, 1, 1) + beta.reshape(1, C, 1, 1) + x25, 0.0)
    assert jnp.allclose(out, ref, atol=1e-4, rtol=1e-4)

    print("KERNEL_OK")
</pallas_src>

<mosaic_0001>
module attributes {stable_mosaic.version = 11 : i64} {
  func.func @bn_add_relu_kernel(%arg0: i32, %arg1: memref<1x128x784xf32, #tpu.memory_space<vmem>>, %arg2: memref<1x128x784xf32, #tpu.memory_space<vmem>>, %arg3: memref<1x128x1xf32, #tpu.memory_space<vmem>>, %arg4: memref<1x128x1xf32, #tpu.memory_space<vmem>>, %arg5: memref<1x128x784xf32, #tpu.memory_space<vmem>>) attributes {dimension_semantics = [#tpu.dimension_semantics<parallel>], iteration_bounds = array<i64: 1>, scalar_prefetch = 0 : i64, scratch_operands = 0 : i64, tpu.core_type = #tpu.core_type<tc>, window_params = [{transform_indices = @transform_0, window_bounds = array<i64: 1, 128, 784>}, {transform_indices = @transform_1, window_bounds = array<i64: 1, 128, 784>}, {transform_indices = @transform_2, window_bounds = array<i64: 1, 128, 1>}, {transform_indices = @transform_3, window_bounds = array<i64: 1, 128, 1>}, {transform_indices = @transform_4, window_bounds = array<i64: 1, 128, 784>}]} {
    %c0 = arith.constant 0 : index
    %c0_0 = arith.constant 0 : index
    %c0_1 = arith.constant 0 : index
    %0 = vector.load %arg1[%c0, %c0_0, %c0_1] : memref<1x128x784xf32, #tpu.memory_space<vmem>>, vector<1x128x784xf32>
    %cst = arith.constant dense<0.000000e+00> : vector<1x128xf32>
    %1 = vector.multi_reduction <add>, %0, %cst [2] : vector<1x128x784xf32> to vector<1x128xf32>
    %2 = vector.shape_cast %1 : vector<1x128xf32> to vector<1x128x1xf32>
    %cst_2 = arith.constant dense<0.000000e+00> : vector<128x1xf32>
    %3 = vector.multi_reduction <add>, %2, %cst_2 [0] : vector<1x128x1xf32> to vector<128x1xf32>
    %4 = vector.shape_cast %3 : vector<128x1xf32> to vector<1x128x1xf32>
    %cst_3 = arith.constant 0.00127551018 : f32
    %5 = vector.broadcast %cst_3 : f32 to vector<1x128x1xf32>
    %6 = arith.mulf %4, %5 : vector<1x128x1xf32>
    %7 = vector.broadcast %6 : vector<1x128x1xf32> to vector<1x128x784xf32>
    %8 = arith.subf %0, %7 : vector<1x128x784xf32>
    %9 = arith.mulf %8, %8 : vector<1x128x784xf32>
    %cst_4 = arith.constant dense<0.000000e+00> : vector<1x128xf32>
    %10 = vector.multi_reduction <add>, %9, %cst_4 [2] : vector<1x128x784xf32> to vector<1x128xf32>
    %11 = vector.shape_cast %10 : vector<1x128xf32> to vector<1x128x1xf32>
    %cst_5 = arith.constant dense<0.000000e+00> : vector<128x1xf32>
    %12 = vector.multi_reduction <add>, %11, %cst_5 [0] : vector<1x128x1xf32> to vector<128x1xf32>
    %13 = vector.shape_cast %12 : vector<128x1xf32> to vector<1x128x1xf32>
    %cst_6 = arith.constant 0.00127551018 : f32
    %14 = vector.broadcast %cst_6 : f32 to vector<1x128x1xf32>
    %15 = arith.mulf %13, %14 : vector<1x128x1xf32>
    %c0_7 = arith.constant 0 : index
    %c0_8 = arith.constant 0 : index
    %c0_9 = arith.constant 0 : index
    %16 = vector.load %arg3[%c0_7, %c0_8, %c0_9] : memref<1x128x1xf32, #tpu.memory_space<vmem>>, vector<1x128x1xf32>
    %cst_10 = arith.constant 9.99999974E-6 : f32
    %17 = vector.broadcast %cst_10 : f32 to vector<1x128x1xf32>
    %18 = arith.addf %15, %17 : vector<1x128x1xf32>
    %19 = math.rsqrt %18 : vector<1x128x1xf32>
    %20 = arith.mulf %16, %19 : vector<1x128x1xf32>
    %c0_11 = arith.constant 0 : index
    %c0_12 = arith.constant 0 : index
    %c0_13 = arith.constant 0 : index
    %21 = vector.load %arg4[%c0_11, %c0_12, %c0_13] : memref<1x128x1xf32, #tpu.memory_space<vmem>>, vector<1x128x1xf32>
    %22 = arith.mulf %6, %20 : vector<1x128x1xf32>
    %23 = arith.subf %21, %22 : vector<1x128x1xf32>
    %24 = vector.broadcast %20 : vector<1x128x1xf32> to vector<1x128x784xf32>
    %25 = arith.mulf %0, %24 : vector<1x128x784xf32>
    %26 = vector.broadcast %23 : vector<1x128x1xf32> to vector<1x128x784xf32>
    %27 = arith.addf %25, %26 : vector<1x128x784xf32>
    %c0_14 = arith.constant 0 : index
    %c0_15 = arith.constant 0 : index
    %c0_16 = arith.constant 0 : index
    %28 = vector.load %arg2[%c0_14, %c0_15, %c0_16] : memref<1x128x784xf32, #tpu.memory_space<vmem>>, vector<1x128x784xf32>
    %29 = arith.addf %27, %28 : vector<1x128x784xf32>
    %cst_17 = arith.constant 0.000000e+00 : f32
    %30 = vector.broadcast %cst_17 : f32 to vector<1x128x784xf32>
    %31 = arith.maximumf %29, %30 : vector<1x128x784xf32>
    %c0_18 = arith.constant 0 : index
    %c0_19 = arith.constant 0 : index
    %c0_20 = arith.constant 0 : index
    %32 = vector.load %arg5[%c0_18, %c0_19, %c0_20] : memref<1x128x784xf32, #tpu.memory_space<vmem>>, vector<1x128x784xf32>
    tpu.vector_store %arg5[%c0_18, %c0_19, %c0_20], %31 {strides = array<i32>} : memref<1x128x784xf32, #tpu.memory_space<vmem>>, vector<1x128x784xf32>,
    return
  }
  func.func @transform_0(%arg0: i32) -> (i32, i32, i32) {
    %c0_i32 = arith.constant 0 : i32
    %c0_i32_0 = arith.constant 0 : i32
    %c0_i32_1 = arith.constant 0 : i32
    return %c0_i32, %arg0, %c0_i32_0 : i32, i32, i32
  }
  func.func @transform_1(%arg0: i32) -> (i32, i32, i32) {
    %c0_i32 = arith.constant 0 : i32
    %c0_i32_0 = arith.constant 0 : i32
    %c0_i32_1 = arith.constant 0 : i32
    return %c0_i32, %arg0, %c0_i32_0 : i32, i32, i32
  }
  func.func @transform_2(%arg0: i32) -> (i32, i32, i32) {
    %c0_i32 = arith.constant 0 : i32
    %c0_i32_0 = arith.constant 0 : i32
    %c0_i32_1 = arith.constant 0 : i32
    return %c0_i32, %arg0, %c0_i32_0 : i32, i32, i32
  }
  func.func @transform_3(%arg0: i32) -> (i32, i32, i32) {
    %c0_i32 = arith.constant 0 : i32
    %c0_i32_0 = arith.constant 0 : i32
    %c0_i32_1 = arith.constant 0 : i32
    return %c0_i32, %arg0, %c0_i32_0 : i32, i32, i32
  }
  func.func @transform_4(%arg0: i32) -> (i32, i32, i32) {
    %c0_i32 = arith.constant 0 : i32
    %c0_i32_0 = arith.constant 0 : i32
    %c0_i32_1 = arith.constant 0 : i32
    return %c0_i32, %arg0, %c0_i32_0 : i32, i32, i32
  }
}

</mosaic_0001>

<bundles_post_ra>
// kernel: tpu_custom_call.1
= control target key start
LH: loop header
LB: loop body
LE: loop exit
PB: predicated region body
PF: predicated region fallthrough
CT: control target
= control target key end

     0   :  { %vm134_vm0 = vcmask 130048   ;;  %s4385_s0 = inlined_call_operand.vmem [shape: f32[1,128,784], index: 0, kind: input, shape index: {}]   ;;  %s4386_s2 = inlined_call_operand.vmem [shape: f32[1,128,1], index: 2, kind: input, shape index: {}]   ;;  %s4387_s3 = inlined_call_operand.vmem [shape: f32[1,128,1], index: 3, kind: input, shape index: {}]   ;;  %s4388_s1 = inlined_call_operand.vmem [shape: f32[1,128,784], index: 1, kind: input, shape index: {}]   ;;  %s4389_s4 = inlined_call_operand.vmem [shape: f32[1,128,784], index: 4, kind: output, shape index: {}]  }
   0x1   :  { %v1830_v0 = vld [vmem:[%s4385_s0 + $0x70] sm:$0xff]  ;;  %v1835_v1 = vld [vmem:[%s4385_s0 + $0x78] sm:$0xff]  ;;  %v1840_v2 = vld [vmem:[%s4385_s0 + $0x80] sm:$0xff] }
   0x2   :  { %v148_v3 = vadd.f32 %v1835_v1, %v1830_v0  ;;  %v1847_v4 = vld [vmem:[%s4385_s0 + $0x88] sm:$0xff]  ;;  %v1852_v5 = vld [vmem:[%s4385_s0] sm:$0xff]  ;;  %v1862_v7 = vld [vmem:[%s4385_s0 + $0x90] sm:$0xff] }
   0x3   :  { %v1857_v6 = vld [vmem:[%s4385_s0 + $0x8] sm:$0xff]  ;;  %v1868_v9 = vld [vmem:[%s4385_s0 + $0x10] sm:$0xff]  ;;  %v1875_v11 = vld [vmem:[%s4385_s0 + $0x98] sm:$0xff] }
   0x4   :  { %v149_v8 = vadd.f32 %v148_v3, %v1840_v2  ;;  %v129_v10 = vadd.f32 %v1857_v6, %v1852_v5  ;;  %v1880_v12 = vld [vmem:[%s4385_s0 + $0x18] sm:$0xff]  ;;  %v1885_v13 = vld [vmem:[%s4385_s0 + $0xa8] sm:$0xff]  ;;  %v1890_v14 = vld [vmem:[%s4385_s0 + $0xa0] sm:$0xff] }
   0x5   :  { %v1897_v17 = vld [vmem:[%s4385_s0 + $0xb0] sm:$0xff]  ;;  %v1902_v18 = vld [vmem:[%s4385_s0 + $0xb8] sm:$0xff]  ;;  %v1907_v19 = vld [vmem:[%s4385_s0 + $0x20] sm:$0xff]  ;;  %v153_v28 = vsel %vm134_vm0, %v1890_v14, 0.0 }
   0x6   :  { %v150_v15 = vadd.f32 %v149_v8, %v1847_v4  ;;  %v130_v16 = vadd.f32 %v129_v10, %v1868_v9  ;;  %v1912_v20 = vld [vmem:[%s4385_s0 + $0x30] sm:$0xff]  ;;  %v1917_v21 = vld [vmem:[%s4385_s0 + $0xc0] sm:$0xff]  ;;  %v157_v22 = vadd.f32 %v1897_v17, %v1885_v13  ;;  %v1926_v25 = vld [vmem:[%s4385_s0 + $0x38] sm:$0xff] }
   0x7   :  { %v1931_v26 = vld [vmem:[%s4385_s0 + $0x40] sm:$0xff]  ;;  %v1936_v27 = vld [vmem:[%s4385_s0 + $0x48] sm:$0xff]  ;;  %v1958_v35 = vld [vmem:[%s4385_s0 + $0xd0] sm:$0xff]  ;;  %v135_v39 = vsel %vm134_vm0, %v1912_v20, 0.0 }
   0x8   :  { %v151_v23 = vadd.f32 %v150_v15, %v1862_v7  ;;  %v131_v24 = vadd.f32 %v130_v16, %v1880_v12  ;;  %v1943_v29 = vld [vmem:[%s4385_s0 + $0x28] sm:$0xff]  ;;  %v158_v31 = vadd.f32 %v157_v22, %v1902_v18  ;;  %v139_v32 = vadd.f32 %v1931_v26, %v1926_v25  ;;  %v1963_v36 = vld [vmem:[%s4385_s0 + $0x50] sm:$0xff]  ;;  %v1968_v37 = vld [vmem:[%s4385_s0 + $0xe0] sm:$0xff] }
   0x9   :  { %v1948_v30 = vld [vmem:[%s4385_s0 + $0xc8] sm:$0xff]  ;;  %v1980_v40 = vld [vmem:[%s4385_s0 + $0xd8] sm:$0xff]  ;;  %v1992_v44 = vld [vmem:[%s4385_s0 + $0xf0] sm:$0xff] }
   0xa   :  { %v152_v33 = vadd.f32 %v151_v23, %v1875_v11  ;;  %v132_v34 = vadd.f32 %v131_v24, %v1907_v19  ;;  %v1973_v38 = vld [vmem:[%s4385_s0 + $0xe8] sm:$0xff]  ;;  %v159_v41 = vadd.f32 %v158_v31, %v1917_v21  ;;  %v1986_v42 = vld [vmem:[%s4385_s0 + $0x58] sm:$0xff]  ;;  %v140_v43 = vadd.f32 %v139_v32, %v1936_v27  ;;  %v2000_v48 = vld [vmem:[%s4385_s0 + $0x60] sm:$0xff] }
   0xb   :  { %v166_v45 = vadd.f32 %v1973_v38, %v1968_v37  ;;  %v2005_v49 = vld [vmem:[%s4385_s0 + $0xf8] sm:$0xff]  ;;  %v2016_v52 = vld [vmem:[%s4385_s0 + $0x68] sm:$0xff]  ;;  %v2023_v55 = vld [vmem:[%s4385_s0 + $0x120] sm:$0xff]  ;;  %v162_v58 = vsel %vm134_vm0, %v1980_v40, 0.0 }
   0xc   :  { %v154_v46 = vadd.f32 %v153_v28, %v152_v33  ;;  %v133_v47 = vadd.f32 %v132_v34, %v1943_v29  ;;  %v2010_v50 = vld [vmem:[%s4385_s0 + $0x118] sm:$0xff]  ;;  %v160_v51 = vadd.f32 %v159_v41, %v1948_v30  ;;  %v141_v53 = vadd.f32 %v140_v43, %v1963_v36  ;;  %v2028_v56 = vld [vmem:[%s4385_s0 + $0x128] sm:$0xff]  ;;  %v2035_v59 = vld [vmem:[%s4385_s0 + $0x100] sm:$0xff] }
   0xd   :  { %v167_v54 = vadd.f32 %v166_v45, %v1992_v44  ;;  %v2040_v60 = vld [vmem:[%s4385_s0 + $0x110] sm:$0xff]  ;;  %v175_v62 = vadd.f32 %v2023_v55, %v2010_v50  ;;  %v2060_v15 = vld [vmem:[%s4385_s0 + $0x158] sm:$0xff]  ;;  %v2065_v16 = vld [vmem:[%s4385_s0 + $0x160] sm:$0xff]  ;;  %v144_v22 = vsel %vm134_vm0, %v2016_v52, 0.0 }
   0xe   :  { %155 = vadd.xlane.f32.xlu1 %v154_v46  ;;  %v136_v57 = vadd.f32 %v135_v39, %v133_v47  ;;  %v2045_v61 = vld [vmem:[%s4385_s0 + $0x130] sm:$0xff]  ;;  %v161_v63 = vadd.f32 %v160_v51, %v1958_v35  ;;  %v142_v3 = vadd.f32 %v141_v53, %v1986_v42  ;;  %4460 = vst [vmem:[#allocation3_spill] sm:$0xff] %v2060_v15  ;;  %4461 = vst [vmem:[#allocation4_spill] sm:$0xff] %v2065_v16  ;;  %v2072_v23 = vld [vmem:[%s4385_s0 + $0x108] sm:$0xff] }
   0xf   :  { %v168_v8 = vadd.f32 %v167_v54, %v2005_v49  ;;  %v2055_v10 = vld [vmem:[%s4385_s0 + $0x150] sm:$0xff]  ;;  %v2077_v24 = vld [vmem:[%s4385_s0 + $0x138] sm:$0xff]  ;;  %v176_v28 = vadd.f32 %v175_v62, %v2028_v56  ;;  %v2087_v39 = vld [vmem:[%s4385_s0 + $0x140] sm:$0xff]  ;;  %v171_v46 = vsel %vm134_vm0, %v2040_v60, 0.0 }
  0x10   :  { %4459 = vst [vmem:[#allocation2_spill] sm:$0xff] %v2055_v10  ;;  %137 = vadd.xlane.f32.xlu0 %v136_v57  ;;  %v184_v31 = vadd.f32 %v2060_v15, %v2055_v10  ;;  %v163_v32 = vadd.f32 %v162_v58, %v161_v63  ;;  %v143_v33 = vadd.f32 %v142_v3, %v2000_v48  ;;  %4462 = vst [vmem:[#allocation5_spill] sm:$0xff] %v2087_v39  ;;  %v2092_v41 = vld [vmem:[%s4385_s0 + $0x168] sm:$0xff]  ;;  %v2102_v45 = vld [vmem:[%s4385_s0 + $0x190] sm:$0xff] }
  0x11   :  { %v169_v34 = vadd.f32 %v168_v8, %v2035_v59  ;;  %4463 = vst [vmem:[#allocation6_spill] sm:$0xff] %v2092_v41  ;;  %v2097_v43 = vld [vmem:[%s4385_s0 + $0x188] sm:$0xff]  ;;  %4465 = vst [vmem:[#allocation8_spill] sm:$0xff] %v2102_v45  ;;  %v177_v51 = vadd.f32 %v176_v28, %v2045_v61  ;;  %v2115_v53 = vld [vmem:[%s4385_s0 + $0x170] sm:$0xff] }
  0x12   :  { %4464 = vst [vmem:[#allocation7_spill] sm:$0xff] %v2097_v43  ;;  %v2109_v47 = vld [vmem:[%s4385_s0 + $0x148] sm:$0xff]  ;;  %4467 = vst [vmem:[#allocation10_spill] sm:$0xff] %v2115_v53  ;;  %v185_v54 = vadd.f32 %v184_v31, %v2065_v16  ;;  %v2121_v57 = vld [vmem:[%s4385_s0 + $0x198] sm:$0xff]  ;;  %v193_v58 = vadd.f32 %v2102_v45, %v2097_v43  ;;  %164 = vadd.xlane.f32.xlu1 %v163_v32  ;;  %v145_v62 = vadd.f32 %v144_v22, %v143_v33 }
  0x13   :  { %4466 = vst [vmem:[#allocation9_spill] sm:$0xff] %v2109_v47  ;;  %4468 = vst [vmem:[#allocation11_spill] sm:$0xff] %v2121_v57  ;;  %v170_v63 = vadd.f32 %v169_v34, %v2072_v23  ;;  %v2129_v3 = vld [vmem:[%s4385_s0 + $0x178] sm:$0xff]  ;;  %v2134_v8 = vld [vmem:[%s4385_s0 + $0x1a0] sm:$0xff]  ;;  %v178_v31 = vadd.f32 %v177_v51, %v2077_v24  ;;  %v180_v43 = vsel %vm134_vm0, %v2109_v47, 0.0 }
  0x14   :  { %4469 = vst [vmem:[#allocation12_spill] sm:$0xff] %v2134_v8  ;;  %v2139_v28 = vld [vmem:[%s4385_s0 + $0x1c0] sm:$0xff]  ;;  %v186_v32 = vadd.f32 %v185_v54, %v2092_v41  ;;  %v194_v33 = vadd.f32 %v193_v58, %v2121_v57  ;;  %v2152_v34 = vld [vmem:[%s4385_s0 + $0x1c8] sm:$0xff]  ;;  %v2157_v45 = vld [vmem:[%s4385_s0 + $0x1d0] sm:$0xff]  ;;  %146 = vadd.xlane.f32.xlu0 %v145_v62 }
  0x15   :  { %4470 = vst [vmem:[#allocation13_spill] sm:$0xff] %v2139_v28  ;;  %v2145_v22 = vld [vmem:[%s4385_s0 + $0x180] sm:$0xff]  ;;  %4472 = vst [vmem:[#allocation15_spill] sm:$0xff] %v2152_v34  ;;  %v172_v51 = vadd.f32 %v171_v46, %v170_v63  ;;  %v2164_v54 = vld [vmem:[%s4385_s0 + $0x1a8] sm:$0xff]  ;;  %v202_v46 = vadd.f32 %v2152_v34, %v2139_v28  ;;  %v179_v62 = vadd.f32 %v178_v31, %v2087_v39 }
  0x16   :  { %4471 = vst [vmem:[#allocation14_spill] sm:$0xff] %v2145_v22  ;;  %4473 = vst [vmem:[#allocation16_spill] sm:$0xff] %v2157_v45  ;;  %v2169_v58 = vld [vmem:[%s4385_s0 + $0x1b8] sm:$0xff]  ;;  %v187_v63 = vadd.f32 %v186_v32, %v2115_v53  ;;  %v195_v41 = vadd.f32 %v194_v33, %v2134_v8  ;;  %v2189_v15 = vld [vmem:[%s4385_s0 + $0x200] sm:$0xff]  ;;  %v189_v31 = vsel %vm134_vm0, %v2145_v22, 0.0 }
  0x17   :  { %4474 = vst [vmem:[#allocation17_spill] sm:$0xff] %v2164_v54  ;;  %4475 = vst [vmem:[#allocation18_spill] sm:$0xff] %v2169_v58  ;;  %v2174_v57 = vld [vmem:[%s4385_s0 + $0x1d8] sm:$0xff]  ;;  %v2194_v34 = vld [vmem:[%s4385_s0 + $0x208] sm:$0xff]  ;;  %v203_v28 = vadd.f32 %v202_v46, %v2157_v45  ;;  %v181_v53 = vadd.f32 %v180_v43, %v179_v62 }
  0x18   :  { %4476 = vst [vmem:[#allocation19_spill] sm:$0xff] %v2174_v57  ;;  %v2184_v16 = vld [vmem:[%s4385_s0 + $0x1f8] sm:$0xff]  ;;  %4478 = vst [vmem:[#allocation21_spill] sm:$0xff] %v2189_v15  ;;  %v2201_v32 = vld [vmem:[%s4385_s0 + $0x1b0] sm:$0xff]  ;;  %v188_v10 = vadd.f32 %v187_v63, %v2129_v3  ;;  %v196_v22 = vadd.f32 %v195_v41, %v2164_v54  ;;  %173 = vadd.xlane.f32.xlu0 %v172_v51  ;;  %v198_v41 = vsel %vm134_vm0, %v2169_v58, 0.0 }
  0x19   :  { %4477 = vst [vmem:[#allocation20_spill] sm:$0xff] %v2184_v16  ;;  %4479 = vst [vmem:[#allocation22_spill] sm:$0xff] %v2194_v34  ;;  %v2206_v33 = vld [vmem:[%s4385_s0 + $0x1e0] sm:$0xff]  ;;  %v211_v8 = vadd.f32 %v2189_v15, %v2184_v16  ;;  %v2216_v39 = vld [vmem:[%s4385_s0 + $0x1e8] sm:$0xff]  ;;  %v204_v63 = vadd.f32 %v203_v28, %v2174_v57  ;;  %182 = vadd.xlane.f32.xlu1 %v181_v53 }
  0x1a   :  { %4480 = vst [vmem:[#allocation23_spill] sm:$0xff] %v2201_v32  ;;  %4481 = vst [vmem:[#allocation24_spill] sm:$0xff] %v2206_v33  ;;  %v2221_v47 = vld [vmem:[%s4385_s0 + $0x210] sm:$0xff]  ;;  %v2231_v43 = vld [vmem:[%s4385_s0 + $0x238] sm:$0xff]  ;;  %v190_v58 = vadd.f32 %v189_v31, %v188_v10  ;;  %v197_v54 = vadd.f32 %v196_v22, %v2201_v32 }
  0x1b   :  { %4482 = vst [vmem:[#allocation25_spill] sm:$0xff] %v2216_v39  ;;  %4483 = vst [vmem:[#allocation26_spill] sm:$0xff] %v2221_v47  ;;  %v2226_v46 = vld [vmem:[%s4385_s0 + $0x230] sm:$0xff]  ;;  %v2244_v15 = vld [vmem:[%s4385_s0 + $0x218] sm:$0xff]  ;;  %v212_v16 = vadd.f32 %v211_v8, %v2194_v34  ;;  %v205_v53 = vadd.f32 %v204_v63, %v2206_v33 }
  0x1c   :  { %4484 = vst [vmem:[#allocation27_spill] sm:$0xff] %v2226_v46  ;;  %4485 = vst [vmem:[#allocation28_spill] sm:$0xff] %v2231_v43  ;;  %v2238_v62 = vld [vmem:[%s4385_s0 + $0x1f0] sm:$0xff]  ;;  %v2250_v51 = vld [vmem:[%s4385_s0 + $0x240] sm:$0xff]  ;;  %v220_v45 = vadd.f32 %v2231_v43, %v2226_v46  ;;  %v199_v63 = vadd.f32 %v198_v41, %v197_v54  ;;  %191 = vadd.xlane.f32.xlu0 %v190_v58 }
  0x1d   :  { %4486 = vst [vmem:[#allocation29_spill] sm:$0xff] %v2238_v62  ;;  %4487 = vst [vmem:[#allocation30_spill] sm:$0xff] %v2244_v15  ;;  %v2258_v28 = vld [vmem:[%s4385_s0 + $0x220] sm:$0xff]  ;;  %v2263_v8 = vld [vmem:[%s4385_s0 + $0x248] sm:$0xff]  ;;  %v213_v22 = vadd.f32 %v212_v16, %v2221_v47  ;;  %v207_v33 = vsel %vm134_vm0, %v2238_v62, 0.0  ;;  %v206_v41 = vadd.f32 %v205_v53, %v2216_v39 }
  0x1e   :  { %4488 = vst [vmem:[#allocation31_spill] sm:$0xff] %v2250_v51  ;;  %4489 = vst [vmem:[#allocation32_spill] sm:$0xff] %v2258_v28  ;;  %v2268_v34 = vld [vmem:[%s4385_s0 + $0x268] sm:$0xff]  ;;  %v221_v31 = vadd.f32 %v220_v45, %v2250_v51  ;;  %v2281_v43 = vld [vmem:[%s4385_s0 + $0x270] sm:$0xff]  ;;  %200 = vadd.xlane.f32.xlu1 %v199_v63 }
  0x1f   :  { %4490 = vst [vmem:[#allocation33_spill] sm:$0xff] %v2263_v8  ;;  %4491 = vst [vmem:[#allocation34_spill] sm:$0xff] %v2268_v34  ;;  %v2274_v10 = vld [vmem:[%s4385_s0 + $0x228] sm:$0xff]  ;;  %v2286_v46 = vld [vmem:[%s4385_s0 + $0x278] sm:$0xff]  ;;  %v229_v54 = vadd.f32 %v2281_v43, %v2268_v34  ;;  %v214_v47 = vadd.f32 %v213_v22, %v2244_v15 }
  0x20   :  { %4492 = vst [vmem:[#allocation35_spill] sm:$0xff] %v2274_v10  ;;  %4493 = vst [vmem:[#allocation36_spill] sm:$0xff] %v2281_v43  ;;  %v2293_v16 = vld [vmem:[%s4385_s0 + $0x250] sm:$0xff]  ;;  %v2298_v45 = vld [vmem:[%s4385_s0 + $0x260] sm:$0xff]  ;;  %v222_v62 = vadd.f32 %v221_v31, %v2263_v8  ;;  %v216_v53 = vsel %vm134_vm0, %v2274_v10, 0.0  ;;  %v208_v8 = vadd.f32 %v207_v33, %v206_v41 }
  0x21   :  { %4494 = vst [vmem:[#allocation37_spill] sm:$0xff] %v2286_v46  ;;  %4495 = vst [vmem:[#allocation38_spill] sm:$0xff] %v2293_v16  ;;  %v2303_v51 = vld [vmem:[%s4385_s0 + $0x280] sm:$0xff]  ;;  %v2318_v32 = vld [vmem:[%s4385_s0 + $0x2a8] sm:$0xff]  ;;  %v230_v43 = vadd.f32 %v229_v54, %v2286_v46  ;;  %v215_v63 = vadd.f32 %v214_v47, %v2258_v28  ;;  %v225_v33 = vsel %vm134_vm0, %v2298_v45, 0.0 }
  0x22   :  { %4496 = vst [vmem:[#allocation39_spill] sm:$0xff] %v2298_v45  ;;  %4497 = vst [vmem:[#allocation40_spill] sm:$0xff] %v2303_v51  ;;  %v2313_v57 = vld [vmem:[%s4385_s0 + $0x2a0] sm:$0xff]  ;;  %v2323_v58 = vld [vmem:[%s4385_s0 + $0x2b0] sm:$0xff]  ;;  %v223_v10 = vadd.f32 %v222_v62, %v2293_v16  ;;  %209 = vadd.xlane.f32.xlu0 %v208_v8 }
  0x23   :  { %4498 = vst [vmem:[#allocation41_spill] sm:$0xff] %v2313_v57  ;;  %4499 = vst [vmem:[#allocation42_spill] sm:$0xff] %v2318_v32  ;;  %v2330_v22 = vld [vmem:[%s4385_s0 + $0x258] sm:$0xff]  ;;  %v2335_v31 = vld [vmem:[%s4385_s0 + $0x288] sm:$0xff]  ;;  %v238_v34 = vadd.f32 %v2318_v32, %v2313_v57  ;;  %v231_v41 = vadd.f32 %v230_v43, %v2303_v51  ;;  %v217_v16 = vadd.f32 %v216_v53, %v215_v63 }
  0x24   :  { %4500 = vst [vmem:[#allocation43_spill] sm:$0xff] %v2323_v58  ;;  %4501 = vst [vmem:[#allocation44_spill] sm:$0xff] %v2335_v31  ;;  %v2345_v15 = vld [vmem:[%s4385_s0 + $0x290] sm:$0xff]  ;;  %v2350_v39 = vld [vmem:[%s4385_s0 + $0x2b8] sm:$0xff]  ;;  %v224_v28 = vadd.f32 %v223_v10, %v2330_v22 }
  0x25   :  { %4502 = vst [vmem:[#allocation45_spill] sm:$0xff] %v2345_v15  ;;  %4503 = vst [vmem:[#allocation46_spill] sm:$0xff] %v2350_v39  ;;  %v2355_v54 = vld [vmem:[%s4385_s0 + $0x2d8] sm:$0xff]  ;;  %v2360_v47 = vld [vmem:[%s4385_s0 + $0x2e0] sm:$0xff]  ;;  %v239_v57 = vadd.f32 %v238_v34, %v2323_v58  ;;  %v232_v8 = vadd.f32 %v231_v41, %v2335_v31  ;;  %218 = vadd.xlane.f32.xlu1 %v217_v16 }
  0x26   :  { %4504 = vst [vmem:[#allocation47_spill] sm:$0xff] %v2355_v54  ;;  %4505 = vst [vmem:[#allocation48_spill] sm:$0xff] %v2360_v47  ;;  %v2367_v62 = vld [vmem:[%s4385_s0 + $0x298] sm:$0xff]  ;;  %v2373_v32 = vld [vmem:[%s4385_s0 + $0x2c0] sm:$0xff]  ;;  %v247_v45 = vadd.f32 %v2360_v47, %v2355_v54  ;;  %v226_v41 = vadd.f32 %v225_v33, %v224_v28 }
  0x27   :  { %4506 = vst [vmem:[#allocation49_spill] sm:$0xff] %v2367_v62  ;;  %4507 = vst [vmem:[#allocation50_spill] sm:$0xff] %v2373_v32  ;;  %v2379_v46 = vld [vmem:[%s4385_s0 + $0x2e8] sm:$0xff]  ;;  %v2392_v34 = vld [vmem:[%s4385_s0 + $0x2f0] sm:$0xff]  ;;  %v240_v53 = vadd.f32 %v239_v57, %v2350_v39  ;;  %v234_v31 = vsel %vm134_vm0, %v2367_v62, 0.0  ;;  %v233_v16 = vadd.f32 %v232_v8, %v2345_v15 }
  0x28   :  { %4508 = vst [vmem:[#allocation51_spill] sm:$0xff] %v2379_v46  ;;  %v2387_v43 = vld [vmem:[%s4385_s0 + $0x2c8] sm:$0xff]  ;;  %4509 = vst [vmem:[#allocation52_spill] sm:$0xff] %v2392_v34  ;;  %v2397_v58 = vld [vmem:[%s4385_s0 + $0x310] sm:$0xff]  ;;  %v248_v63 = vadd.f32 %v247_v45, %v2379_v46  ;;  %227 = vadd.xlane.f32.xlu0 %v226_v41 }
  0x29   :  { %4510 = vst [vmem:[#allocation53_spill] sm:$0xff] %v2397_v58  ;;  %v2403_v10 = vld [vmem:[%s4385_s0 + $0x2d0] sm:$0xff]  ;;  %v2410_v47 = vld [vmem:[%s4385_s0 + $0x318] sm:$0xff]  ;;  %v2415_v54 = vld [vmem:[%s4385_s0 + $0x320] sm:$0xff]  ;;  %v241_v33 = vadd.f32 %v240_v53, %v2373_v32 }
  0x2a   :  { %4511 = vst [vmem:[#allocation54_spill] sm:$0xff] %v2403_v10  ;;  %4512 = vst [vmem:[#allocation55_spill] sm:$0xff] %v2410_v47  ;;  %v2422_v57 = vld [vmem:[%s4385_s0 + $0x2f8] sm:$0xff]  ;;  %v2427_v45 = vld [vmem:[%s4385_s0 + $0x308] sm:$0xff]  ;;  %v256_v28 = vadd.f32 %v2410_v47, %v2397_v58  ;;  %v249_v39 = vadd.f32 %v248_v63, %v2392_v34  ;;  %v243_v8 = vsel %vm134_vm0, %v2403_v10, 0.0  ;;  %v235_v34 = vadd.f32 %v234_v31, %v233_v16 }
  0x2b   :  { %4513 = vst [vmem:[#allocation56_spill] sm:$0xff] %v2415_v54  ;;  %4514 = vst [vmem:[#allocation57_spill] sm:$0xff] %v2427_v45  ;;  %v2432_v46 = vld [vmem:[%s4385_s0 + $0x328] sm:$0xff]  ;;  %v2447_v51 = vld [vmem:[%s4385_s0 + $0x350] sm:$0xff]  ;;  %v242_v32 = vadd.f32 %v241_v33, %v2387_v43 }
  0x2c   :  { %4515 = vst [vmem:[#allocation58_spill] sm:$0xff] %v2432_v46  ;;  %v2442_v62 = vld [vmem:[%s4385_s0 + $0x348] sm:$0xff]  ;;  %4517 = vst [vmem:[#allocation60_spill] sm:$0xff] %v2447_v51  ;;  %v2452_v47 = vld [vmem:[%s4385_s0 + $0x358] sm:$0xff]  ;;  %v257_v63 = vadd.f32 %v256_v28, %v2415_v54  ;;  %v250_v15 = vadd.f32 %v249_v39, %v2422_v57  ;;  %v252_v28 = vsel %vm134_vm0, %v2427_v45, 0.0  ;;  %236 = vadd.xlane.f32.xlu1 %v235_v34 }
  0x2d   :  { %4516 = vst [vmem:[#allocation59_spill] sm:$0xff] %v2442_v62  ;;  %4518 = vst [vmem:[#allocation61_spill] sm:$0xff] %v2452_v47  ;;  %v2459_v53 = vld [vmem:[%s4385_s0 + $0x300] sm:$0xff]  ;;  %v265_v58 = vadd.f32 %v2447_v51, %v2442_v62  ;;  %v2469_v41 = vld [vmem:[%s4385_s0 + $0x330] sm:$0xff]  ;;  %v244_v33 = vadd.f32 %v243_v8, %v242_v32 }
  0x2e   :  { %4519 = vst [vmem:[#allocation62_spill] sm:$0xff] %v2459_v53  ;;  %4520 = vst [vmem:[#allocation63_spill] sm:$0xff] %v2469_v41  ;;  %v2474_v10 = vld [vmem:[%s4385_s0 + $0x360] sm:$0xff]  ;;  %v258_v39 = vadd.f32 %v257_v63, %v2432_v46  ;;  %v251_v51 = vadd.f32 %v250_v15, %v2459_v53  ;;  %v2489_v62 = vld [vmem:[%s4385_s0 + $0x338] sm:$0xff] }
  0x2f   :  { %4521 = vst [vmem:[#allocation64_spill] sm:$0xff] %v2474_v10  ;;  %v2481_v31 = vld [vmem:[%s4385_s0 + $0x340] sm:$0xff]  ;;  %v266_v16 = vadd.f32 %v265_v58, %v2452_v47  ;;  %4523 = vst [vmem:[#allocation66_spill] sm:$0xff] %v2489_v62  ;;  %v2494_v54 = vld [vmem:[%s4385_s0 + $0x368] sm:$0xff]  ;;  %245 = vadd.xlane.f32.xlu0 %v244_v33 }
  0x30   :  { %4522 = vst [vmem:[#allocation65_spill] sm:$0xff] %v2481_v31  ;;  %4524 = vst [vmem:[#allocation67_spill] sm:$0xff] %v2494_v54  ;;  %v259_v45 = vadd.f32 %v258_v39, %v2469_v41  ;;  %v2500_v58 = vld [vmem:[%s4385_s0 + $0x378] sm:$0xff]  ;;  %v253_v15 = vadd.f32 %v252_v28, %v251_v51  ;;  %v261_v34 = vsel %vm134_vm0, %v2481_v31, 0.0  ;;  %v2508_v8 = vld [vmem:[%s4385_s0 + $0x370] sm:$0xff] }
  0x31   :  { %4525 = vst [vmem:[#allocation68_spill] sm:$0xff] %v2500_v58  ;;  %v267_v32 = vadd.f32 %v266_v16, %v2474_v10  ;;  %4526 = vst [vmem:[#allocation69_spill] sm:$0xff] %v2508_v8  ;;  %v270_v47 = vsel %vm134_vm0, %v2500_v58, 0.0 }
  0x32   :  { %v260_v63 = vadd.f32 %v259_v45, %v2489_v62  ;;  %254 = vadd.xlane.f32.xlu1 %v253_v15 }
  0x33   :  { %v268_v39 = vadd.f32 %v267_v32, %v2494_v54 }
  0x34   :  { %v262_v41 = vadd.f32 %v261_v34, %v260_v63 }
  0x35   :  { %v269_v16 = vadd.f32 %v268_v39, %v2508_v8 }
  0x36   :  { %263 = vadd.xlane.f32.xlu0 %v262_v41 }
  0x37   :  { %v271_v51 = vadd.f32 %v270_v47, %v269_v16 }
  0x39   :  { %272 = vadd.xlane.f32.xlu1 %v271_v51 }
  0x9b   :  { %v156_v28 = vpop.xlane.xlu1 %155 }
  0x9c   :  { %v2515_v33 = vmul.f32 0.0012755102, %v156_v28 }
  0x9d   :  { %v138_v10 = vpop.xlane.xlu0 %137 }
  0x9e   :  { %v2517_v31 = vmul.f32 0.0012755102, %v138_v10  ;;  %v320_v45 = vsub.f32 %v1830_v0, %v2515_v33  ;;  %v321_v32 = vsub.f32 %v1835_v1, %v2515_v33  ;;  %v322_v15 = vsub.f32 %v1840_v2, %v2515_v33 }
  0x9f   :  { %v323_v41 = vsub.f32 %v1847_v4, %v2515_v33  ;;  %v165_v47 = vpop.xlane.xlu1 %164  ;;  %v324_v0 = vsub.f32 %v1862_v7, %v2515_v33  ;;  %v326_v7 = vsub.f32 %v1890_v14, %v2515_v33 }
  0xa0   :  { %4527 = vst [vmem:[#allocation70_spill] sm:$0xff] %v2517_v31  ;;  %v306_v34 = vsub.f32 %v1852_v5, %v2517_v31  ;;  %v307_v10 = vsub.f32 %v1857_v6, %v2517_v31  ;;  %v308_v63 = vsub.f32 %v1868_v9, %v2517_v31  ;;  %v309_v1 = vsub.f32 %v1880_v12, %v2517_v31 }
  0xa1   :  { %v310_v2 = vsub.f32 %v1907_v19, %v2517_v31  ;;  %v311_v4 = vsub.f32 %v1943_v29, %v2517_v31  ;;  %v312_v5 = vsub.f32 %v1912_v20, %v2517_v31  ;;  %v147_v39 = vpop.xlane.xlu0 %146  ;;  %v325_v9 = vsub.f32 %v1875_v11, %v2515_v33 }
  0xa2   :  { %v418_v6 = vmul.f32 %v306_v34, %v306_v34  ;;  %v419_v16 = vmul.f32 %v307_v10, %v307_v10  ;;  %v2547_v51 = vmul.f32 0.0012755102, %v165_v47  ;;  %v2549_v12 = vmul.f32 0.0012755102, %v147_v39 }
  0xa3   :  { %v420_v19 = vmul.f32 %v308_v63, %v308_v63  ;;  %v424_v28 = vmul.f32 %v312_v5, %v312_v5  ;;  %v432_v29 = vmul.f32 %v320_v45, %v320_v45  ;;  %v433_v58 = vmul.f32 %v321_v32, %v321_v32 }
  0xa4   :  { %v530_v8 = vadd.f32 %v419_v16, %v418_v6  ;;  %v434_v54 = vmul.f32 %v322_v15, %v322_v15  ;;  %v421_v20 = vmul.f32 %v309_v1, %v309_v1  ;;  %v422_v31 = vmul.f32 %v310_v2, %v310_v2 }
  0xa5   :  { %v423_v34 = vmul.f32 %v311_v4, %v311_v4  ;;  %v535_v10 = vsel %vm134_vm0, %v424_v28, 0.0  ;;  %v174_v62 = vpop.xlane.xlu0 %173  ;;  %v435_v46 = vmul.f32 %v323_v41, %v323_v41  ;;  %v548_v53 = vadd.f32 %v433_v58, %v432_v29 }
  0xa6   :  { %v531_v11 = vadd.f32 %v530_v8, %v420_v19  ;;  %v313_v14 = vsub.f32 %v1926_v25, %v2549_v12  ;;  %v183_v47 = vpop.xlane.xlu1 %182  ;;  %v436_v39 = vmul.f32 %v324_v0, %v324_v0  ;;  %v438_v63 = vmul.f32 %v326_v7, %v326_v7 }
  0xa7   :  { %v314_v45 = vsub.f32 %v1931_v26, %v2549_v12  ;;  %v315_v32 = vsub.f32 %v1936_v27, %v2549_v12  ;;  %v437_v1 = vmul.f32 %v325_v9, %v325_v9  ;;  %v549_v2 = vadd.f32 %v548_v53, %v434_v54 }
  0xa8   :  { %v532_v15 = vadd.f32 %v531_v11, %v421_v20  ;;  %v316_v8 = vsub.f32 %v1963_v36, %v2549_v12  ;;  %v2560_v41 = vmul.f32 0.0012755102, %v174_v62  ;;  %v2562_v58 = vmul.f32 0.0012755102, %v183_v47 }
  0xa9   :  { %v319_v25 = vsub.f32 %v2016_v52, %v2549_v12  ;;  %v425_v0 = vmul.f32 %v313_v14, %v313_v14  ;;  %v192_v4 = vpop.xlane.xlu0 %191  ;;  %v550_v26 = vadd.f32 %v549_v2, %v435_v46  ;;  %v317_v27 = vsub.f32 %v1986_v42, %v2549_v12 }
  0xaa   :  { %v533_v5 = vadd.f32 %v532_v15, %v422_v31  ;;  %v426_v6 = vmul.f32 %v314_v45, %v314_v45  ;;  %v2568_v16 = vmul.f32 0.0012755102, %v192_v4  ;;  %v553_v36 = vsel %vm134_vm0, %v438_v63, 0.0 }
  0xab   :  { %v201_v54 = vpop.xlane.xlu1 %200  ;;  %v318_v62 = vsub.f32 %v2000_v48, %v2549_v12  ;;  %v427_v53 = vmul.f32 %v315_v32, %v315_v32  ;;  %v551_v7 = vadd.f32 %v550_v26, %v436_v39  ;;  %v428_v52 = vmul.f32 %v316_v8, %v316_v8 }
  0xac   :  { %v534_v9 = vadd.f32 %v533_v5, %v423_v34  ;;  %v431_v19 = vmul.f32 %v319_v25, %v319_v25  ;;  %v539_v28 = vadd.f32 %v426_v6, %v425_v0  ;;  %v327_v46 = vsub.f32 %v1885_v13, %v2547_v51 }
  0xad   :  { %v328_v42 = vsub.f32 %v1897_v17, %v2547_v51  ;;  %v329_v31 = vsub.f32 %v1902_v18, %v2547_v51  ;;  %v552_v11 = vadd.f32 %v551_v7, %v437_v1  ;;  %v429_v14 = vmul.f32 %v317_v27, %v317_v27 }
  0xae   :  { %v536_v20 = vadd.f32 %v535_v10, %v534_v9  ;;  %v330_v48 = vsub.f32 %v1917_v21, %v2547_v51  ;;  %v2581_v34 = vmul.f32 0.0012755102, %v201_v54  ;;  %v430_v47 = vmul.f32 %v318_v62, %v318_v62 }
  0xaf   :  { %v210_v29 = vpop.xlane.xlu0 %209  ;;  %v540_v39 = vadd.f32 %v539_v28, %v427_v53  ;;  %v544_v63 = vsel %vm134_vm0, %v431_v19, 0.0  ;;  %v331_v17 = vsub.f32 %v1948_v30, %v2547_v51  ;;  %v333_v18 = vsub.f32 %v1980_v40, %v2547_v51 }
  0xb0   :  { %537 = vadd.xlane.f32.xlu0 %v536_v20  ;;  %v439_v10 = vmul.f32 %v327_v46, %v327_v46  ;;  %v440_v45 = vmul.f32 %v328_v42, %v328_v42  ;;  %v2588_v32 = vmul.f32 0.0012755102, %v210_v29  ;;  %v332_v21 = vsub.f32 %v1958_v35, %v2547_v51 }
  0xb1   :  { %v541_v15 = vadd.f32 %v540_v39, %v428_v52  ;;  %v441_v1 = vmul.f32 %v329_v31, %v329_v31  ;;  %v554_v25 = vadd.f32 %v553_v36, %v552_v11  ;;  %v442_v0 = vmul.f32 %v330_v48, %v330_v48 }
  0xb2   :  { %v219_v13 = vpop.xlane.xlu1 %218  ;;  %v557_v4 = vadd.f32 %v440_v45, %v439_v10  ;;  %v445_v30 = vmul.f32 %v333_v18, %v333_v18  ;;  %v334_v40 = vsub.f32 %v1968_v37, %v2560_v41  ;;  %v335_v26 = vsub.f32 %v1973_v38, %v2560_v41 }
  0xb3   :  { %v2592_v2 = vmul.f32 0.0012755102, %v219_v13  ;;  %v542_v5 = vadd.f32 %v541_v15, %v429_v14  ;;  %v443_v27 = vmul.f32 %v331_v17, %v331_v17  ;;  %v336_v35 = vsub.f32 %v1992_v44, %v2560_v41 }
  0xb4   :  { %555 = vadd.xlane.f32.xlu0 %v554_v25  ;;  %v558_v6 = vadd.f32 %v557_v4, %v441_v1  ;;  %v337_v54 = vsub.f32 %v2005_v49, %v2560_v41  ;;  %v444_v9 = vmul.f32 %v332_v21, %v332_v21  ;;  %v340_v37 = vsub.f32 %v2040_v60, %v2560_v41 }
  0xb5   :  { %v228_v8 = vpop.xlane.xlu0 %227  ;;  %v543_v62 = vadd.f32 %v542_v5, %v430_v47  ;;  %v338_v38 = vsub.f32 %v2035_v59, %v2560_v41  ;;  %v446_v52 = vmul.f32 %v334_v40, %v334_v40  ;;  %v447_v19 = vmul.f32 %v335_v26, %v335_v26 }
  0xb6   :  { %v2602_v36 = vmul.f32 0.0012755102, %v228_v8  ;;  %v559_v7 = vadd.f32 %v558_v6, %v442_v0  ;;  %v562_v44 = vsel %vm134_vm0, %v445_v30, 0.0  ;;  %v339_v49 = vsub.f32 %v2072_v23, %v2560_v41  ;;  %v4529_v0 = vld [vmem:[#allocation5_spill] sm:$0xff] }
  0xb7   :  { %v545_v28 = vadd.f32 %v544_v63, %v543_v62  ;;  %v448_v42 = vmul.f32 %v336_v35, %v336_v35  ;;  %v449_v20 = vmul.f32 %v337_v54, %v337_v54  ;;  %v452_v11 = vmul.f32 %v340_v37, %v340_v37  ;;  %v4532_v35 = vld [vmem:[#allocation4_spill] sm:$0xff]  ;;  %v4533_v62 = vld [vmem:[#allocation6_spill] sm:$0xff] }
  0xb8   :  { %v560_v29 = vadd.f32 %v559_v7, %v443_v27  ;;  %v566_v60 = vadd.f32 %v447_v19, %v446_v52  ;;  %v341_v59 = vsub.f32 %v2010_v50, %v2562_v58  ;;  %v342_v14 = vsub.f32 %v2023_v55, %v2562_v58  ;;  %v4528_v50 = vld [vmem:[#allocation9_spill] sm:$0xff]  ;;  %v4531_v27 = vld [vmem:[#allocation3_spill] sm:$0xff]  ;;  %v4534_v7 = vld [vmem:[#allocation10_spill] sm:$0xff] }
  0xb9   :  { %v237_v53 = vpop.xlane.xlu1 %236  ;;  %546 = vadd.xlane.f32.xlu1 %v545_v28  ;;  %v343_v48 = vsub.f32 %v2028_v56, %v2562_v58  ;;  %v450_v39 = vmul.f32 %v338_v38, %v338_v38  ;;  %v344_v13 = vsub.f32 %v2045_v61, %v2562_v58  ;;  %v451_v17 = vmul.f32 %v339_v49, %v339_v49  ;;  %v4535_v28 = vld [vmem:[#allocation14_spill] sm:$0xff] }
  0xba   :  { %v2611_v31 = vmul.f32 0.0012755102, %v237_v53  ;;  %v561_v23 = vadd.f32 %v560_v29, %v444_v9  ;;  %v567_v18 = vadd.f32 %v566_v60, %v448_v42  ;;  %v345_v10 = vsub.f32 %v2077_v24, %v2562_v58  ;;  %v4530_v24 = vld [vmem:[#allocation2_spill] sm:$0xff] }
  0xbb   :  { %v347_v45 = vsub.f32 %v4528_v50, %v2562_v58  ;;  %v453_v15 = vmul.f32 %v341_v59, %v341_v59  ;;  %v454_v21 = vmul.f32 %v342_v14, %v342_v14  ;;  %v455_v56 = vmul.f32 %v343_v48, %v343_v48 }
  0xbc   :  { %v246_v46 = vpop.xlane.xlu0 %245  ;;  %v563_v55 = vadd.f32 %v562_v44, %v561_v23  ;;  %v568_v1 = vadd.f32 %v567_v18, %v449_v20  ;;  %v571_v8 = vsel %vm134_vm0, %v452_v11, 0.0  ;;  %v346_v61 = vsub.f32 %v4529_v0, %v2562_v58  ;;  %v4541_v0 = vld [vmem:[#allocation23_spill] sm:$0xff] }
  0xbd   :  { %v2619_v47 = vmul.f32 0.0012755102, %v246_v46  ;;  %v456_v4 = vmul.f32 %v344_v13, %v344_v13  ;;  %v459_v5 = vmul.f32 %v347_v45, %v347_v45  ;;  %v575_v30 = vadd.f32 %v454_v21, %v453_v15  ;;  %v4537_v13 = vld [vmem:[#allocation8_spill] sm:$0xff]  ;;  %v4538_v45 = vld [vmem:[#allocation11_spill] sm:$0xff] }
  0xbe   :  { %564 = vadd.xlane.f32.xlu1 %v563_v55  ;;  %v348_v40 = vsub.f32 %v4530_v24, %v2568_v16  ;;  %v569_v26 = vadd.f32 %v568_v1, %v450_v39  ;;  %v349_v6 = vsub.f32 %v4531_v27, %v2568_v16  ;;  %v350_v54 = vsub.f32 %v4532_v35, %v2568_v16  ;;  %v4539_v15 = vld [vmem:[#allocation12_spill] sm:$0xff]  ;;  %v4540_v1 = vld [vmem:[#allocation17_spill] sm:$0xff] }
  0xbf   :  { %v255_v63 = vpop.xlane.xlu1 %254  ;;  %v351_v53 = vsub.f32 %v4533_v62, %v2568_v16  ;;  %v457_v9 = vmul.f32 %v345_v10, %v345_v10  ;;  %v576_v37 = vadd.f32 %v575_v30, %v455_v56  ;;  %v352_v38 = vsub.f32 %v4534_v7, %v2568_v16 }
  0xc0   :  { %v2628_v25 = vmul.f32 0.0012755102, %v255_v63  ;;  %v353_v52 = vsub.f32 %v2129_v3, %v2568_v16  ;;  %v570_v19 = vadd.f32 %v569_v26, %v451_v17  ;;  %v354_v46 = vsub.f32 %v4535_v28, %v2568_v16  ;;  %v4536_v63 = vld [vmem:[#allocation7_spill] sm:$0xff]  ;;  %v4545_v28 = vld [vmem:[#allocation16_spill] sm:$0xff] }
  0xc1   :  { %v460_v44 = vmul.f32 %v348_v40, %v348_v40  ;;  %v461_v49 = vmul.f32 %v349_v6, %v349_v6  ;;  %v458_v42 = vmul.f32 %v346_v61, %v346_v61  ;;  %v577_v29 = vadd.f32 %v576_v37, %v456_v4  ;;  %v4542_v4 = vld [vmem:[#allocation18_spill] sm:$0xff]  ;;  %v4543_v37 = vld [vmem:[#allocation13_spill] sm:$0xff] }
  0xc2   :  { %v580_v20 = vsel %vm134_vm0, %v459_v5, 0.0  ;;  %v462_v11 = vmul.f32 %v350_v54, %v350_v54  ;;  %v572_v60 = vadd.f32 %v571_v8, %v570_v19  ;;  %v463_v59 = vmul.f32 %v351_v53, %v351_v53 }
  0xc3   :  { %v464_v14 = vmul.f32 %v352_v38, %v352_v38  ;;  %v584_v48 = vadd.f32 %v461_v49, %v460_v44  ;;  %v578_v23 = vadd.f32 %v577_v29, %v457_v9  ;;  %v466_v39 = vmul.f32 %v354_v46, %v354_v46  ;;  %v264_v18 = vpop.xlane.xlu0 %263  ;;  %v4546_v44 = vld [vmem:[#allocation19_spill] sm:$0xff] }
  0xc4   :  { %v355_v3 = vsub.f32 %v4536_v63, %v2581_v34  ;;  %v356_v17 = vsub.f32 %v4537_v13, %v2581_v34  ;;  %573 = vadd.xlane.f32.xlu0 %v572_v60  ;;  %v465_v10 = vmul.f32 %v353_v52, %v353_v52  ;;  %v357_v55 = vsub.f32 %v4538_v45, %v2581_v34  ;;  %v4544_v52 = vld [vmem:[#allocation15_spill] sm:$0xff] }
  0xc5   :  { %v585_v50 = vadd.f32 %v584_v48, %v462_v11  ;;  %v358_v21 = vsub.f32 %v4539_v15, %v2581_v34  ;;  %v579_v56 = vadd.f32 %v578_v23, %v458_v42  ;;  %v359_v8 = vsub.f32 %v4540_v1, %v2581_v34  ;;  %v4547_v11 = vld [vmem:[#allocation24_spill] sm:$0xff] }
  0xc6   :  { %v360_v61 = vsub.f32 %v4541_v0, %v2581_v34  ;;  %v361_v5 = vsub.f32 %v4542_v4, %v2581_v34  ;;  %v467_v24 = vmul.f32 %v355_v3, %v355_v3  ;;  %v468_v40 = vmul.f32 %v356_v17, %v356_v17  ;;  %v4549_v17 = vld [vmem:[#allocation25_spill] sm:$0xff] }
  0xc7   :  { %v586_v30 = vadd.f32 %v585_v50, %v463_v59  ;;  %v469_v26 = vmul.f32 %v357_v55, %v357_v55  ;;  %v2661_v27 = vmul.f32 0.0012755102, %v264_v18  ;;  %v581_v6 = vadd.f32 %v580_v20, %v579_v56  ;;  %v4548_v59 = vld [vmem:[#allocation29_spill] sm:$0xff]  ;;  %v4550_v55 = vld [vmem:[#allocation20_spill] sm:$0xff] }
  0xc8   :  { %v589_v35 = vsel %vm134_vm0, %v466_v39, 0.0  ;;  %v470_v54 = vmul.f32 %v358_v21, %v358_v21  ;;  %v473_v53 = vmul.f32 %v361_v5, %v361_v5  ;;  %v593_v9 = vadd.f32 %v468_v40, %v467_v24  ;;  %v4551_v56 = vld [vmem:[#allocation21_spill] sm:$0xff]  ;;  %v4554_v24 = vld [vmem:[#allocation30_spill] sm:$0xff] }
  0xc9   :  { %v587_v62 = vadd.f32 %v586_v30, %v464_v14  ;;  %v362_v7 = vsub.f32 %v4543_v37, %v2588_v32  ;;  %582 = vadd.xlane.f32.xlu1 %v581_v6  ;;  %v471_v38 = vmul.f32 %v359_v8, %v359_v8  ;;  %v363_v19 = vsub.f32 %v4544_v52, %v2588_v32  ;;  %v4552_v8 = vld [vmem:[#allocation22_spill] sm:$0xff] }
  0xca   :  { %v364_v46 = vsub.f32 %v4545_v28, %v2588_v32  ;;  %v365_v49 = vsub.f32 %v4546_v44, %v2588_v32  ;;  %v472_v29 = vmul.f32 %v360_v61, %v360_v61  ;;  %v594_v20 = vadd.f32 %v593_v9, %v469_v26  ;;  %v4553_v61 = vld [vmem:[#allocation26_spill] sm:$0xff]  ;;  %v4555_v26 = vld [vmem:[#allocation32_spill] sm:$0xff] }
  0xcb   :  { %v588_v42 = vadd.f32 %v587_v62, %v465_v10  ;;  %v366_v60 = vsub.f32 %v4547_v11, %v2588_v32  ;;  %v368_v14 = vsub.f32 %v4548_v59, %v2588_v32  ;;  %v474_v48 = vmul.f32 %v362_v7, %v362_v7 }
  0xcc   :  { %v475_v23 = vmul.f32 %v363_v19, %v363_v19  ;;  %v476_v39 = vmul.f32 %v364_v46, %v364_v46  ;;  %v595_v3 = vadd.f32 %v594_v20, %v470_v54  ;;  %v598_v13 = vsel %vm134_vm0, %v473_v53, 0.0  ;;  %v4556_v54 = vld [vmem:[#allocation35_spill] sm:$0xff] }
  0xcd   :  { %v590_v63 = vadd.f32 %v589_v35, %v588_v42  ;;  %v367_v18 = vsub.f32 %v4549_v17, %v2588_v32  ;;  %v477_v50 = vmul.f32 %v365_v49, %v365_v49  ;;  %v480_v10 = vmul.f32 %v368_v14, %v368_v14  ;;  %v4557_v42 = vld [vmem:[#allocation27_spill] sm:$0xff]  ;;  %v273_v14 = vpop.xlane.xlu1 %272  ;;  %v4561_v17 = vld [vmem:[#allocation38_spill] sm:$0xff] }
  0xce   :  { %v602_v45 = vadd.f32 %v475_v23, %v474_v48  ;;  %v369_v15 = vsub.f32 %v4550_v55, %v2592_v2  ;;  %v596_v21 = vadd.f32 %v595_v3, %v471_v38  ;;  %v370_v1 = vsub.f32 %v4551_v56, %v2592_v2 }
  0xcf   :  { %591 = vadd.xlane.f32.xlu0 %v590_v63  ;;  %v371_v0 = vsub.f32 %v4552_v8, %v2592_v2  ;;  %v372_v4 = vsub.f32 %v4553_v61, %v2592_v2  ;;  %v478_v5 = vmul.f32 %v366_v60, %v366_v60  ;;  %v373_v40 = vsub.f32 %v4554_v24, %v2592_v2  ;;  %v4559_v60 = vld [vmem:[#allocation31_spill] sm:$0xff]  ;;  %v4560_v63 = vld [vmem:[#allocation33_spill] sm:$0xff] }
  0xd0   :  { %v603_v30 = vadd.f32 %v602_v45, %v476_v39  ;;  %v374_v6 = vsub.f32 %v4555_v26, %v2592_v2  ;;  %v597_v35 = vadd.f32 %v596_v21, %v472_v29  ;;  %v375_v62 = vsub.f32 %v4556_v54, %v2592_v2  ;;  %v4558_v29 = vld [vmem:[#allocation28_spill] sm:$0xff] }
  0xd1   :  { %v481_v53 = vmul.f32 %v369_v15, %v369_v15  ;;  %v482_v9 = vmul.f32 %v370_v1, %v370_v1  ;;  %v479_v37 = vmul.f32 %v367_v18, %v367_v18  ;;  %v607_v38 = vsel %vm134_vm0, %v480_v10, 0.0 }
  0xd2   :  { %v604_v7 = vadd.f32 %v603_v30, %v477_v50  ;;  %v483_v52 = vmul.f32 %v371_v0, %v371_v0  ;;  %v599_v19 = vadd.f32 %v598_v13, %v597_v35  ;;  %v484_v28 = vmul.f32 %v372_v4, %v372_v4  ;;  %v4562_v50 = vld [vmem:[#allocation39_spill] sm:$0xff]  ;;  %v4563_v30 = vld [vmem:[#allocation34_spill] sm:$0xff] }
  0xd3   :  { %v485_v46 = vmul.f32 %v373_v40, %v373_v40  ;;  %v611_v44 = vadd.f32 %v482_v9, %v481_v53  ;;  %v376_v20 = vsub.f32 %v4557_v42, %v2602_v36  ;;  %v377_v11 = vsub.f32 %v4558_v29, %v2602_v36  ;;  %v4564_v40 = vld [vmem:[#allocation36_spill] sm:$0xff] }
  0xd4   :  { %v605_v49 = vadd.f32 %v604_v7, %v478_v5  ;;  %v378_v59 = vsub.f32 %v4559_v60, %v2602_v36  ;;  %600 = vadd.xlane.f32.xlu1 %v599_v19  ;;  %v486_v48 = vmul.f32 %v374_v6, %v374_v6  ;;  %v487_v23 = vmul.f32 %v375_v62, %v375_v62  ;;  %v4566_v62 = vld [vmem:[#allocation40_spill] sm:$0xff]  ;;  %v4568_v19 = vld [vmem:[#allocation49_spill] sm:$0xff] }
  0xd5   :  { %v612_v39 = vadd.f32 %v611_v44, %v483_v52  ;;  %v379_v3 = vsub.f32 %v4560_v63, %v2602_v36  ;;  %v380_v18 = vsub.f32 %v4561_v17, %v2602_v36  ;;  %v382_v10 = vsub.f32 %v4562_v50, %v2602_v36  ;;  %v4572_v17 = vld [vmem:[#allocation43_spill] sm:$0xff]  ;;  %v4573_v50 = vld [vmem:[#allocation46_spill] sm:$0xff] }
  0xd6   :  { %v606_v13 = vadd.f32 %v605_v49, %v479_v37  ;;  %v488_v45 = vmul.f32 %v376_v20, %v376_v20  ;;  %v381_v15 = vsub.f32 %v2330_v22, %v2602_v36  ;;  %v489_v21 = vmul.f32 %v377_v11, %v377_v11  ;;  %v4565_v22 = vld [vmem:[#allocation37_spill] sm:$0xff] }
  0xd7   :  { %v613_v55 = vadd.f32 %v612_v39, %v484_v28  ;;  %v490_v56 = vmul.f32 %v378_v59, %v378_v59  ;;  %v2708_v1 = vmul.f32 0.0012755102, %v273_v14  ;;  %v491_v0 = vmul.f32 %v379_v3, %v379_v3  ;;  %v4569_v11 = vld [vmem:[#allocation45_spill] sm:$0xff]  ;;  %v4571_v39 = vld [vmem:[#allocation42_spill] sm:$0xff] }
  0xd8   :  { %v608_v8 = vadd.f32 %v607_v38, %v606_v13  ;;  %v494_v61 = vmul.f32 %v382_v10, %v382_v10  ;;  %v620_v5 = vadd.f32 %v489_v21, %v488_v45  ;;  %v383_v24 = vsub.f32 %v4563_v30, %v2611_v31  ;;  %v4567_v38 = vld [vmem:[#allocation44_spill] sm:$0xff] }
  0xd9   :  { %v614_v4 = vadd.f32 %v613_v55, %v485_v46  ;;  %v384_v26 = vsub.f32 %v4564_v40, %v2611_v31  ;;  %v616_v6 = vsel %vm134_vm0, %v487_v23, 0.0  ;;  %v492_v35 = vmul.f32 %v380_v18, %v380_v18 }
  0xda   :  { %609 = vadd.xlane.f32.xlu0 %v608_v8  ;;  %v385_v54 = vsub.f32 %v4565_v22, %v2611_v31  ;;  %v386_v53 = vsub.f32 %v4566_v62, %v2611_v31  ;;  %v493_v37 = vmul.f32 %v381_v15, %v381_v15  ;;  %v621_v7 = vadd.f32 %v620_v5, %v490_v56  ;;  %v4574_v15 = vld [vmem:[#allocation50_spill] sm:$0xff] }
  0xdb   :  { %v615_v9 = vadd.f32 %v614_v4, %v486_v48  ;;  %v387_v52 = vsub.f32 %v4567_v38, %v2611_v31  ;;  %v389_v28 = vsub.f32 %v4568_v19, %v2611_v31  ;;  %v495_v46 = vmul.f32 %v383_v24, %v383_v24  ;;  %v4570_v48 = vld [vmem:[#allocation41_spill] sm:$0xff]  ;;  %v4575_v56 = vld [vmem:[#allocation54_spill] sm:$0xff] }
  0xdc   :  { %v496_v44 = vmul.f32 %v384_v26, %v384_v26  ;;  %v497_v49 = vmul.f32 %v385_v54, %v385_v54  ;;  %v622_v20 = vadd.f32 %v621_v7, %v491_v0  ;;  %v625_v29 = vsel %vm134_vm0, %v494_v61, 0.0  ;;  %v4576_v54 = vld [vmem:[#allocation47_spill] sm:$0xff] }
  0xdd   :  { %v617_v42 = vadd.f32 %v616_v6, %v615_v9  ;;  %v388_v60 = vsub.f32 %v4569_v11, %v2611_v31  ;;  %v498_v59 = vmul.f32 %v386_v53, %v386_v53  ;;  %v390_v23 = vsub.f32 %v4570_v48, %v2619_v47  ;;  %v4577_v9 = vld [vmem:[#allocation48_spill] sm:$0xff] }
  0xde   :  { %v629_v14 = vadd.f32 %v496_v44, %v495_v46  ;;  %v391_v63 = vsub.f32 %v4571_v39, %v2619_v47  ;;  %v623_v3 = vadd.f32 %v622_v20, %v492_v35  ;;  %v499_v13 = vmul.f32 %v387_v52, %v387_v52  ;;  %v4579_v52 = vld [vmem:[#allocation52_spill] sm:$0xff] }
  0xdf   :  { %618 = vadd.xlane.f32.xlu1 %v617_v42  ;;  %v392_v18 = vsub.f32 %v4572_v17, %v2619_v47  ;;  %v393_v10 = vsub.f32 %v4573_v50, %v2619_v47  ;;  %v501_v45 = vmul.f32 %v389_v28, %v389_v28  ;;  %v394_v21 = vsub.f32 %v4574_v15, %v2619_v47  ;;  %v4580_v42 = vld [vmem:[#allocation62_spill] sm:$0xff]  ;;  %v4583_v50 = vld [vmem:[#allocation55_spill] sm:$0xff] }
  0xe0   :  { %v630_v55 = vadd.f32 %v629_v14, %v497_v49  ;;  %v396_v8 = vsub.f32 %v4575_v56, %v2619_v47  ;;  %v624_v0 = vadd.f32 %v623_v3, %v493_v37  ;;  %v502_v61 = vmul.f32 %v390_v23, %v390_v23  ;;  %v4578_v37 = vld [vmem:[#allocation51_spill] sm:$0xff]  ;;  %v4581_v14 = vld [vmem:[#allocation57_spill] sm:$0xff] }
  0xe1   :  { %v503_v4 = vmul.f32 %v391_v63, %v391_v63  ;;  %v504_v5 = vmul.f32 %v392_v18, %v392_v18  ;;  %v500_v30 = vmul.f32 %v388_v60, %v388_v60  ;;  %v395_v40 = vsub.f32 %v2387_v43, %v2619_v47 }
  0xe2   :  { %v631_v24 = vadd.f32 %v630_v55, %v498_v59  ;;  %v505_v26 = vmul.f32 %v393_v10, %v393_v10  ;;  %v626_v6 = vadd.f32 %v625_v29, %v624_v0  ;;  %v508_v35 = vmul.f32 %v396_v8, %v396_v8  ;;  %v4585_v8 = vld [vmem:[#allocation58_spill] sm:$0xff] }
  0xe3   :  { %v638_v22 = vadd.f32 %v503_v4, %v502_v61  ;;  %v397_v62 = vsub.f32 %v4576_v54, %v2628_v25  ;;  %v398_v7 = vsub.f32 %v4577_v9, %v2628_v25  ;;  %v399_v38 = vsub.f32 %v4578_v37, %v2628_v25 }
  0xe4   :  { %v632_v53 = vadd.f32 %v631_v24, %v499_v13  ;;  %v400_v19 = vsub.f32 %v4579_v52, %v2628_v25  ;;  %627 = vadd.xlane.f32.xlu0 %v626_v6  ;;  %v634_v43 = vsel %vm134_vm0, %v501_v45, 0.0  ;;  %v506_v28 = vmul.f32 %v394_v21, %v394_v21  ;;  %v4584_v45 = vld [vmem:[#allocation56_spill] sm:$0xff] }
  0xe5   :  { %v639_v46 = vadd.f32 %v638_v22, %v504_v5  ;;  %v401_v44 = vsub.f32 %v2422_v57, %v2628_v25  ;;  %v402_v20 = vsub.f32 %v4580_v42, %v2628_v25  ;;  %v509_v29 = vmul.f32 %v397_v62, %v397_v62  ;;  %v4582_v57 = vld [vmem:[#allocation53_spill] sm:$0xff]  ;;  %v4586_v5 = vld [vmem:[#allocation63_spill] sm:$0xff]  ;;  %v4588_v62 = vld [vmem:[#allocation66_spill] sm:$0xff] }
  0xe6   :  { %v633_v49 = vadd.f32 %v632_v53, %v500_v30  ;;  %v510_v11 = vmul.f32 %v398_v7, %v398_v7  ;;  %v507_v60 = vmul.f32 %v395_v40, %v395_v40  ;;  %v403_v48 = vsub.f32 %v4581_v14, %v2628_v25 }
  0xe7   :  { %v640_v59 = vadd.f32 %v639_v46, %v505_v26  ;;  %v511_v23 = vmul.f32 %v399_v38, %v399_v38  ;;  %v643_v63 = vsel %vm134_vm0, %v508_v35, 0.0  ;;  %v512_v3 = vmul.f32 %v400_v19, %v400_v19  ;;  %v4587_v26 = vld [vmem:[#allocation65_spill] sm:$0xff]  ;;  %v4589_v38 = vld [vmem:[#allocation59_spill] sm:$0xff]  ;;  %v4590_v19 = vld [vmem:[#allocation60_spill] sm:$0xff] }
  0xe8   :  { %v635_v39 = vadd.f32 %v634_v43, %v633_v49  ;;  %v647_v13 = vadd.f32 %v510_v11, %v509_v29  ;;  %v404_v18 = vsub.f32 %v4582_v57, %v2661_v27  ;;  %v405_v10 = vsub.f32 %v4583_v50, %v2661_v27  ;;  %v4591_v46 = vld [vmem:[#allocation61_spill] sm:$0xff]  ;;  %v4592_v49 = vld [vmem:[#allocation64_spill] sm:$0xff] }
  0xe9   :  { %v641_v17 = vadd.f32 %v640_v59, %v506_v28  ;;  %v406_v55 = vsub.f32 %v4584_v45, %v2661_v27  ;;  %v513_v15 = vmul.f32 %v401_v44, %v401_v44  ;;  %v514_v21 = vmul.f32 %v402_v20, %v402_v20  ;;  %v4593_v59 = vld [vmem:[#allocation67_spill] sm:$0xff] }
  0xea   :  { %636 = vadd.xlane.f32.xlu1 %v635_v39  ;;  %v648_v56 = vadd.f32 %v647_v13, %v511_v23  ;;  %v407_v0 = vsub.f32 %v4585_v8, %v2661_v27  ;;  %v515_v4 = vmul.f32 %v403_v48, %v403_v48  ;;  %v408_v30 = vsub.f32 %v4586_v5, %v2661_v27 }
  0xeb   :  { %v642_v61 = vadd.f32 %v641_v17, %v507_v60  ;;  %v516_v24 = vmul.f32 %v404_v18, %v404_v18  ;;  %v410_v6 = vsub.f32 %v4587_v26, %v2661_v27  ;;  %v517_v35 = vmul.f32 %v405_v10, %v405_v10  ;;  %v4594_v17 = vld [vmem:[#allocation68_spill] sm:$0xff]  ;;  %v4595_v18 = vld [vmem:[#allocation69_spill] sm:$0xff] }
  0xec   :  { %v649_v40 = vadd.f32 %v648_v56, %v512_v3  ;;  %v518_v22 = vmul.f32 %v406_v55, %v406_v55  ;;  %v409_v53 = vsub.f32 %v4588_v62, %v2661_v27  ;;  %v519_v9 = vmul.f32 %v407_v0, %v407_v0 }
  0xed   :  { %v644_v54 = vadd.f32 %v643_v63, %v642_v61  ;;  %v656_v37 = vadd.f32 %v517_v35, %v516_v24  ;;  %v411_v52 = vsub.f32 %v4589_v38, %v2708_v1  ;;  %v412_v43 = vsub.f32 %v4590_v19, %v2708_v1 }
  0xee   :  { %v650_v7 = vadd.f32 %v649_v40, %v513_v15  ;;  %v652_v28 = vsel %vm134_vm0, %v515_v4, 0.0  ;;  %v413_v44 = vsub.f32 %v4591_v46, %v2708_v1  ;;  %v414_v42 = vsub.f32 %v4592_v49, %v2708_v1 }
  0xef   :  { %645 = vadd.xlane.f32.xlu0 %v644_v54  ;;  %v520_v29 = vmul.f32 %v408_v30, %v408_v30  ;;  %v522_v11 = vmul.f32 %v410_v6, %v410_v6  ;;  %v657_v60 = vadd.f32 %v656_v37, %v518_v22  ;;  %v415_v14 = vsub.f32 %v4593_v59, %v2708_v1 }
  0xf0   :  { %v651_v20 = vadd.f32 %v650_v7, %v514_v21  ;;  %v523_v48 = vmul.f32 %v411_v52, %v411_v52  ;;  %v524_v23 = vmul.f32 %v412_v43, %v412_v43  ;;  %v525_v39 = vmul.f32 %v413_v44, %v413_v44  ;;  %v706_v52 = vld [vmem:[%s4386_s2] sm:$0xff] }
  0xf1   :  { %v521_v3 = vmul.f32 %v409_v53, %v409_v53  ;;  %v658_v13 = vadd.f32 %v657_v60, %v519_v9  ;;  %v417_v57 = vsub.f32 %v4594_v17, %v2708_v1  ;;  %v416_v50 = vsub.f32 %v4595_v18, %v2708_v1 }
  0xf2   :  { %v653_v63 = vadd.f32 %v652_v28, %v651_v20  ;;  %v526_v10 = vmul.f32 %v414_v42, %v414_v42  ;;  %v665_v45 = vadd.f32 %v524_v23, %v523_v48  ;;  %v1801_v15 = vmov 0   ;;  %v707_v20 = vld [vmem:[%s4386_s2 + $0x8] sm:$0xff]  ;;  %v708_v48 = vld [vmem:[%s4386_s2 + $0x10] sm:$0xff] }
  0xf3   :  { %v659_v55 = vadd.f32 %v658_v13, %v520_v29  ;;  %1655 = vset.pattern.permute.xlu0 %v1801_v15  ;;  %v661_v21 = vsel %vm134_vm0, %v522_v11, 0.0  ;;  %v527_v56 = vmul.f32 %v415_v14, %v415_v14  ;;  %1656 = vset.pattern.permute.xlu1 %v1801_v15  ;;  %v529_v61 = vmul.f32 %v417_v57, %v417_v57  ;;  %v709_v13 = vld [vmem:[%s4386_s2 + $0x18] sm:$0xff] }
  0xf4   :  { %654 = vadd.xlane.f32.xlu1 %v653_v63  ;;  %v666_v8 = vadd.f32 %v665_v45, %v525_v39  ;;  %v528_v4 = vmul.f32 %v416_v50, %v416_v50 }
  0xf5   :  { %v660_v0 = vadd.f32 %v659_v55, %v521_v3  ;;  %v670_v40 = vsel %vm134_vm0, %v529_v61, 0.0 }
  0xf6   :  { %v667_v5 = vadd.f32 %v666_v8, %v526_v10  ;;  %v710_v10 = vld [vmem:[%s4386_s2 + $0x20] sm:$0xff] }
  0xf7   :  { %v662_v30 = vadd.f32 %v661_v21, %v660_v0 }
  0xf8   :  { %v668_v24 = vadd.f32 %v667_v5, %v527_v56  ;;  %v711_v56 = vld [vmem:[%s4386_s2 + $0x28] sm:$0xff] }
  0xf9   :  { %663 = vadd.xlane.f32.xlu0 %v662_v30  ;;  %v712_v30 = vld [vmem:[%s4386_s2 + $0x30] sm:$0xff] }
  0xfa   :  { %v669_v26 = vadd.f32 %v668_v24, %v528_v4 }
  0xfc   :  { %v671_v6 = vadd.f32 %v670_v40, %v669_v26 }
  0xfe   :  { %672 = vadd.xlane.f32.xlu1 %v671_v6 }
 0x13d   :  { %v538_v35 = vpop.xlane.xlu0 %537 }
 0x13e   :  { %v690_v22 = vmul.f32 0.0012755102, %v538_v35 }
 0x140   :  { %v722_v54 = vadd.f32 1e-05, %v690_v22 }
 0x141   :  { %v556_v62 = vpop.xlane.xlu0 %555 }
 0x142   :  { %1657 = vrsqrt.f32 %v722_v54  ;;  %v692_v53 = vmul.f32 0.0012755102, %v556_v62  ;;  %v713_v54 = vld [vmem:[%s4386_s2 + $0x38] sm:$0xff] }
 0x144   :  { %v724_v38 = vadd.f32 1e-05, %v692_v53 }
 0x146   :  { %v547_v9 = vpop.xlane.xlu1 %546 }
 0x147   :  { %v691_v7 = vmul.f32 0.0012755102, %v547_v9 }
 0x149   :  { %v723_v37 = vadd.f32 1e-05, %v691_v7 }
 0x14b   :  { %1659 = vrsqrt.f32 %v723_v37  ;;  %v565_v19 = vpop.xlane.xlu1 %564  ;;  %v714_v37 = vld [vmem:[%s4386_s2 + $0x40] sm:$0xff] }
 0x14c   :  { %v1658_v43 = vpop.eup %1657  ;;  %v693_v28 = vmul.f32 0.0012755102, %v565_v19  ;;  %1661 = vrsqrt.f32 %v724_v38 }
 0x14d   :  { %v2790_v46 = vmul.f32 %v1658_v43, %v706_v52 }
 0x14e   :  { %v725_v44 = vadd.f32 1e-05, %v693_v28 }
 0x14f   :  { %820 = vperm.xlu0 %1655, %v2790_v46  }
 0x150   :  { %1663 = vrsqrt.f32 %v725_v44  ;;  %v715_v44 = vld [vmem:[%s4386_s2 + $0x48] sm:$0xff] }
 0x151   :  { %v574_v49 = vpop.xlane.xlu0 %573 }
 0x152   :  { %v694_v42 = vmul.f32 0.0012755102, %v574_v49 }
 0x154   :  { %v726_v11 = vadd.f32 1e-05, %v694_v42 }
 0x155   :  { %v1660_v29 = vpop.eup %1659 }
 0x156   :  { %v2796_v60 = vmul.f32 %v1660_v29, %v707_v20  ;;  %v1662_v59 = vpop.eup %1661  ;;  %1665 = vrsqrt.f32 %v726_v11  ;;  %v583_v14 = vpop.xlane.xlu1 %582 }
 0x157   :  { %v695_v23 = vmul.f32 0.0012755102, %v583_v14  ;;  %v2802_v63 = vmul.f32 %v1662_v59, %v708_v48  ;;  %v716_v14 = vld [vmem:[%s4386_s2 + $0x50] sm:$0xff] }
 0x158   :  { %825 = vperm.xlu1 %1656, %v2796_v60  }
 0x159   :  { %v727_v39 = vadd.f32 1e-05, %v695_v23 }
 0x15a   :  { %v1664_v3 = vpop.eup %1663 }
 0x15b   :  { %1667 = vrsqrt.f32 %v727_v39  ;;  %v2808_v18 = vmul.f32 %v1664_v3, %v709_v13 }
 0x15c   :  { %v592_v17 = vpop.xlane.xlu0 %591  ;;  %830 = vperm.xlu1 %1656, %v2802_v63  }
 0x15d   :  { %v696_v57 = vmul.f32 0.0012755102, %v592_v17  ;;  %v717_v17 = vld [vmem:[%s4386_s2 + $0x58] sm:$0xff] }
 0x15f   :  { %v728_v50 = vadd.f32 1e-05, %v696_v57 }
 0x160   :  { %835 = vperm.xlu1 %1656, %v2808_v18   ;;  %v1666_v45 = vpop.eup %1665 }
 0x161   :  { %1669 = vrsqrt.f32 %v728_v50  ;;  %v601_v55 = vpop.xlane.xlu1 %600  ;;  %v2814_v15 = vmul.f32 %v1666_v45, %v710_v10 }
 0x162   :  { %v697_v21 = vmul.f32 0.0012755102, %v601_v55  ;;  %v718_v55 = vld [vmem:[%s4386_s2 + $0x60] sm:$0xff] }
 0x164   :  { %840 = vperm.xlu1 %1656, %v2814_v15   ;;  %v729_v8 = vadd.f32 1e-05, %v697_v21 }
 0x165   :  { %v1668_v0 = vpop.eup %1667 }
 0x166   :  { %1671 = vrsqrt.f32 %v729_v8  ;;  %v2820_v4 = vmul.f32 %v1668_v0, %v711_v56 }
 0x167   :  { %v610_v61 = vpop.xlane.xlu0 %609 }
 0x168   :  { %v698_v5 = vmul.f32 0.0012755102, %v610_v61  ;;  %845 = vperm.xlu1 %1656, %v2820_v4  }
 0x16a   :  { %v730_v24 = vadd.f32 1e-05, %v698_v5  ;;  %v719_v5 = vld [vmem:[%s4386_s2 + $0x68] sm:$0xff] }
 0x16b   :  { %v1670_v40 = vpop.eup %1669 }
 0x16c   :  { %1673 = vrsqrt.f32 %v730_v24  ;;  %v619_v26 = vpop.xlane.xlu1 %618  ;;  %v2826_v6 = vmul.f32 %v1670_v40, %v712_v30 }
 0x16d   :  { %v699_v35 = vmul.f32 0.0012755102, %v619_v26  ;;  %v720_v26 = vld [vmem:[%s4386_s2 + $0x70] sm:$0xff] }
 0x16e   :  { %850 = vperm.xlu1 %1656, %v2826_v6  }
 0x16f   :  { %v731_v22 = vadd.f32 1e-05, %v699_v35 }
 0x170   :  { %v1672_v62 = vpop.eup %1671 }
 0x171   :  { %1675 = vrsqrt.f32 %v731_v22  ;;  %v628_v53 = vpop.xlane.xlu0 %627  ;;  %v2832_v9 = vmul.f32 %v1672_v62, %v713_v54  ;;  %v4596_v54 = vld [vmem:[#allocation70_spill] sm:$0xff] }
 0x172   :  { %v700_v7 = vmul.f32 0.0012755102, %v628_v53  ;;  %v786_v62 = vmul.f32 %v2790_v46, %v4596_v54  ;;  %v770_v53 = vld [vmem:[%s4387_s3] sm:$0xff]  ;;  %v772_v46 = vld [vmem:[%s4387_s3 + $0x10] sm:$0xff] }
 0x173   :  { %855 = vperm.xlu1 %1656, %v2832_v9   ;;  %v1691_v54 = vld [vmem:[%s4385_s0 + $0x10] sm:$0xff] }
 0x174   :  { %v732_v38 = vadd.f32 1e-05, %v700_v7  ;;  %v721_v7 = vld [vmem:[%s4386_s2 + $0x78] sm:$0xff] }
 0x176   :  { %v1674_v52 = vpop.eup %1673  ;;  %1677 = vrsqrt.f32 %v732_v38  ;;  %v802_v38 = vsub.f32 %v770_v53, %v786_v62  ;;  %v1692_v53 = vld [vmem:[%s4385_s0 + $0x18] sm:$0xff] }
 0x177   :  { %v637_v19 = vpop.xlane.xlu1 %636  ;;  %v2838_v43 = vmul.f32 %v1674_v52, %v714_v37  ;;  %v788_v52 = vmul.f32 %v2802_v63, %v2515_v33  ;;  %v789_v33 = vmul.f32 %v2808_v18, %v2547_v51  ;;  %v776_v51 = vld [vmem:[%s4387_s3 + $0x30] sm:$0xff]  ;;  %v775_v18 = vld [vmem:[%s4387_s3 + $0x28] sm:$0xff] }
 0x178   :  { %v701_v28 = vmul.f32 0.0012755102, %v637_v19 }
 0x179   :  { %860 = vperm.xlu1 %1656, %v2838_v43  }
 0x17a   :  { %v733_v49 = vadd.f32 1e-05, %v701_v28  ;;  %v787_v28 = vmul.f32 %v2796_v60, %v2549_v12  ;;  %v774_v12 = vld [vmem:[%s4387_s3 + $0x20] sm:$0xff]  ;;  %v773_v60 = vld [vmem:[%s4387_s3 + $0x18] sm:$0xff] }
 0x17b   :  { %v1676_v42 = vpop.eup %1675 }
 0x17c   :  { %1679 = vrsqrt.f32 %v733_v49  ;;  %v646_v20 = vpop.xlane.xlu0 %645  ;;  %v2844_v29 = vmul.f32 %v1676_v42, %v715_v44  ;;  %v771_v44 = vld [vmem:[%s4387_s3 + $0x8] sm:$0xff]  ;;  %v804_v49 = vsub.f32 %v772_v46, %v788_v52  ;;  %v790_v42 = vmul.f32 %v2814_v15, %v2560_v41 }
 0x17d   :  { %v702_v11 = vmul.f32 0.0012755102, %v646_v20  ;;  %v803_v20 = vsub.f32 %v771_v44, %v787_v28  ;;  %v791_v41 = vmul.f32 %v2820_v4, %v2562_v58  ;;  %v778_v58 = vld [vmem:[%s4387_s3 + $0x40] sm:$0xff]  ;;  %v777_v4 = vld [vmem:[%s4387_s3 + $0x38] sm:$0xff]  ;;  %v1694_v52 = vld [vmem:[%s4385_s0 + $0x28] sm:$0xff] }
 0x17e   :  { %865 = vperm.xlu0 %1655, %v2844_v29   ;;  %v806_v63 = vsub.f32 %v774_v12, %v790_v42  ;;  %v1695_v28 = vld [vmem:[%s4385_s0 + $0x30] sm:$0xff]  ;;  %v1696_v44 = vld [vmem:[%s4385_s0 + $0x38] sm:$0xff]  ;;  %v1697_v42 = vld [vmem:[%s4385_s0 + $0x40] sm:$0xff] }
 0x17f   :  { %v734_v59 = vadd.f32 1e-05, %v702_v11  ;;  %v792_v11 = vmul.f32 %v2826_v6, %v2568_v16  ;;  %v793_v16 = vmul.f32 %v2832_v9, %v2581_v34  ;;  %v780_v34 = vld [vmem:[%s4387_s3 + $0x50] sm:$0xff]  ;;  %v779_v9 = vld [vmem:[%s4387_s3 + $0x48] sm:$0xff] }
 0x180   :  { %v1678_v48 = vpop.eup %1677 }
 0x181   :  { %1681 = vrsqrt.f32 %v734_v59  ;;  %v655_v23 = vpop.xlane.xlu1 %654  ;;  %v2850_v3 = vmul.f32 %v1678_v48, %v716_v14  ;;  %v805_v59 = vsub.f32 %v773_v60, %v789_v33  ;;  %v808_v15 = vsub.f32 %v776_v51, %v792_v11  ;;  %v1698_v33 = vld [vmem:[%s4385_s0 + $0x48] sm:$0xff]  ;;  %v1699_v60 = vld [vmem:[%s4385_s0 + $0x50] sm:$0xff]  ;;  %v1700_v11 = vld [vmem:[%s4385_s0 + $0x58] sm:$0xff] }
 0x182   :  { %v703_v39 = vmul.f32 0.0012755102, %v655_v23  ;;  %v794_v14 = vmul.f32 %v2838_v43, %v2588_v32  ;;  %v807_v48 = vsub.f32 %v775_v18, %v791_v41  ;;  %v795_v32 = vmul.f32 %v2844_v29, %v2592_v2  ;;  %v782_v2 = vld [vmem:[%s4387_s3 + $0x60] sm:$0xff]  ;;  %v781_v29 = vld [vmem:[%s4387_s3 + $0x58] sm:$0xff]  ;;  %v1702_v18 = vld [vmem:[%s4385_s0 + $0x68] sm:$0xff] }
 0x183   :  { %870 = vperm.xlu1 %1656, %v2850_v3   ;;  %v796_v23 = vmul.f32 %v2850_v3, %v2602_v36  ;;  %v1701_v41 = vld [vmem:[%s4385_s0 + $0x60] sm:$0xff] }
 0x184   :  { %v735_v13 = vadd.f32 1e-05, %v703_v39  ;;  %v810_v6 = vsub.f32 %v778_v58, %v794_v14  ;;  %v809_v39 = vsub.f32 %v777_v4, %v793_v16  ;;  %v1703_v14 = vld [vmem:[%s4385_s0 + $0x70] sm:$0xff]  ;;  %v1704_v16 = vld [vmem:[%s4385_s0 + $0x78] sm:$0xff]  ;;  %v1705_v4 = vld [vmem:[%s4385_s0 + $0x80] sm:$0xff] }
 0x185   :  { %v812_v43 = vsub.f32 %v780_v34, %v796_v23  ;;  %v1707_v34 = vld [vmem:[%s4385_s0 + $0x90] sm:$0xff] }
 0x186   :  { %v1680_v57 = vpop.eup %1679  ;;  %1683 = vrsqrt.f32 %v735_v13  ;;  %v664_v50 = vpop.xlane.xlu0 %663 }
 0x187   :  { %v2856_v10 = vmul.f32 %v1680_v57, %v717_v17  ;;  %v704_v45 = vmul.f32 0.0012755102, %v664_v50  ;;  %v811_v17 = vsub.f32 %v779_v9, %v795_v32 }
 0x189   :  { %875 = vperm.xlu0 %1655, %v2856_v10   ;;  %v736_v21 = vadd.f32 1e-05, %v704_v45  ;;  %v797_v36 = vmul.f32 %v2856_v10, %v2611_v31  ;;  %v784_v31 = vld [vmem:[%s4387_s3 + $0x70] sm:$0xff]  ;;  %v783_v10 = vld [vmem:[%s4387_s3 + $0x68] sm:$0xff] }
 0x18b   :  { %v1682_v56 = vpop.eup %1681  ;;  %1685 = vrsqrt.f32 %v736_v21  ;;  %v673_v8 = vpop.xlane.xlu1 %672  ;;  %v813_v50 = vsub.f32 %v781_v29, %v797_v36 }
 0x18c   :  { %v766_v0 = vmul.f32 %v1682_v56, %v718_v55  ;;  %v705_v61 = vmul.f32 0.0012755102, %v673_v8 }
 0x18e   :  { %880 = vperm.xlu1 %1656, %v766_v0   ;;  %v737_v30 = vadd.f32 1e-05, %v705_v61  ;;  %v798_v13 = vmul.f32 %v766_v0, %v2619_v47 }
 0x190   :  { %v1684_v24 = vpop.eup %1683  ;;  %1687 = vrsqrt.f32 %v737_v30  ;;  %v814_v3 = vsub.f32 %v782_v2, %v798_v13  ;;  %v1710_v2 = vld [vmem:[%s4385_s0 + $0xa8] sm:$0xff] }
 0x191   :  { %v767_v40 = vmul.f32 %v1684_v24, %v719_v5 }
 0x193   :  { %885 = vperm.xlu0 %1655, %v767_v40   ;;  %v799_v47 = vmul.f32 %v767_v40, %v2628_v25 }
 0x195   :  { %v1686_v35 = vpop.eup %1685  ;;  %v815_v55 = vsub.f32 %v783_v10, %v799_v47 }
 0x196   :  { %v768_v22 = vmul.f32 %v1686_v35, %v720_v26  ;;  %v1690_v35 = vld [vmem:[%s4385_s0 + $0x8] sm:$0xff] }
 0x198   :  { %890 = vperm.xlu1 %1656, %v768_v22   ;;  %v800_v57 = vmul.f32 %v768_v22, %v2661_v27  ;;  %v785_v27 = vld [vmem:[%s4387_s3 + $0x78] sm:$0xff] }
 0x19a   :  { %v1688_v37 = vpop.eup %1687  ;;  %v816_v45 = vsub.f32 %v784_v31, %v800_v57  ;;  %v1713_v31 = vld [vmem:[%s4385_s0 + $0xc0] sm:$0xff] }
 0x19b   :  { %v769_v19 = vmul.f32 %v1688_v37, %v721_v7  ;;  %v1693_v37 = vld [vmem:[%s4385_s0 + $0x20] sm:$0xff] }
 0x19c   :  { %1012 = vperm.xlu1 %1656, %v802_v38  }
 0x19d   :  { %895 = vperm.xlu0 %1655, %v769_v19   ;;  %v801_v21 = vmul.f32 %v769_v19, %v2708_v1  ;;  %v1689_v1 = vld [vmem:[%s4385_s0] sm:$0xff] }
 0x19f   :  { %v817_v25 = vsub.f32 %v785_v27, %v801_v21  ;;  %v1715_v21 = vld [vmem:[%s4385_s0 + $0xd0] sm:$0xff] }
 0x1a0   :  { %1022 = vperm.xlu1 %1656, %v804_v49  }
 0x1a1   :  { %1017 = vperm.xlu0 %1655, %v803_v20  }
 0x1a4   :  { %1032 = vperm.xlu1 %1656, %v806_v63  }
 0x1a5   :  { %1027 = vperm.xlu0 %1655, %v805_v59  }
 0x1a8   :  { %1042 = vperm.xlu1 %1656, %v808_v15  }
 0x1a9   :  { %1037 = vperm.xlu0 %1655, %v807_v48  }
 0x1ac   :  { %1052 = vperm.xlu1 %1656, %v810_v6  }
 0x1ad   :  { %1047 = vperm.xlu0 %1655, %v809_v39   ;;  %v1706_v39 = vld [vmem:[%s4385_s0 + $0x88] sm:$0xff] }
 0x1b0   :  { %1062 = vperm.xlu1 %1656, %v812_v43   ;;  %v1708_v43 = vld [vmem:[%s4385_s0 + $0x98] sm:$0xff] }
 0x1b1   :  { %1057 = vperm.xlu0 %1655, %v811_v17   ;;  %v1709_v17 = vld [vmem:[%s4385_s0 + $0xa0] sm:$0xff] }
 0x1b4   :  { %1072 = vperm.xlu1 %1656, %v814_v3   ;;  %v1711_v3 = vld [vmem:[%s4385_s0 + $0xb0] sm:$0xff] }
 0x1b5   :  { %1067 = vperm.xlu0 %1655, %v813_v50   ;;  %v1712_v50 = vld [vmem:[%s4385_s0 + $0xb8] sm:$0xff] }
 0x1b8   :  { %1082 = vperm.xlu1 %1656, %v816_v45   ;;  %v1714_v45 = vld [vmem:[%s4385_s0 + $0xc8] sm:$0xff] }
 0x1b9   :  { %1077 = vperm.xlu0 %1655, %v815_v55  }
 0x1bd   :  { %1087 = vperm.xlu0 %1655, %v817_v25   ;;  %v1716_v25 = vld [vmem:[%s4385_s0 + $0xd8] sm:$0xff] }
 0x1ce   :  { %v821_v24 = vpop.permute.xlu0 %820 }
 0x1cf   :  { %v2958_v26 = vmul.f32 %v1689_v1, %v821_v24  ;;  %v2963_v22 = vmul.f32 %v1690_v35, %v821_v24  ;;  %v2968_v62 = vmul.f32 %v1691_v54, %v821_v24  ;;  %v2973_v7 = vmul.f32 %v1692_v53, %v821_v24  ;;  %v1718_v1 = vld [vmem:[%s4385_s0 + $0xe8] sm:$0xff]  ;;  %v1719_v54 = vld [vmem:[%s4385_s0 + $0xf0] sm:$0xff]  ;;  %v1720_v53 = vld [vmem:[%s4385_s0 + $0xf8] sm:$0xff] }
 0x1d0   :  { %v2978_v38 = vmul.f32 %v1693_v37, %v821_v24  ;;  %v2983_v19 = vmul.f32 %v1694_v52, %v821_v24  ;;  %v2988_v46 = vmul.f32 %v1695_v28, %v821_v24  ;;  %v1721_v52 = vld [vmem:[%s4385_s0 + $0x100] sm:$0xff] }
 0x1d7   :  { %v826_v56 = vpop.permute.xlu1 %825 }
 0x1d8   :  { %v2993_v49 = vmul.f32 %v1696_v44, %v826_v56  ;;  %v2998_v20 = vmul.f32 %v1697_v42, %v826_v56  ;;  %v3003_v12 = vmul.f32 %v1698_v33, %v826_v56  ;;  %v3008_v63 = vmul.f32 %v1699_v60, %v826_v56  ;;  %v1722_v42 = vld [vmem:[%s4385_s0 + $0x108] sm:$0xff]  ;;  %v1723_v60 = vld [vmem:[%s4385_s0 + $0x110] sm:$0xff] }
 0x1d9   :  { %v3013_v59 = vmul.f32 %v1700_v11, %v826_v56  ;;  %v3018_v51 = vmul.f32 %v1701_v41, %v826_v56  ;;  %v3023_v15 = vmul.f32 %v1702_v18, %v826_v56  ;;  %v1724_v41 = vld [vmem:[%s4385_s0 + $0x118] sm:$0xff] }
 0x1db   :  { %v831_v8 = vpop.permute.xlu1 %830 }
 0x1dc   :  { %v3028_v48 = vmul.f32 %v1703_v14, %v831_v8  ;;  %v3033_v58 = vmul.f32 %v1704_v16, %v831_v8  ;;  %v3038_v6 = vmul.f32 %v1705_v4, %v831_v8  ;;  %v3045_v32 = vmul.f32 %v1706_v39, %v831_v8  ;;  %v1725_v14 = vld [vmem:[%s4385_s0 + $0x120] sm:$0xff]  ;;  %v1726_v4 = vld [vmem:[%s4385_s0 + $0x128] sm:$0xff]  ;;  %v1727_v39 = vld [vmem:[%s4385_s0 + $0x130] sm:$0xff] }
 0x1dd   :  { %v3050_v9 = vmul.f32 %v1707_v34, %v831_v8  ;;  %v3055_v13 = vmul.f32 %v1708_v43, %v831_v8  ;;  %v3060_v36 = vmul.f32 %v1709_v17, %v831_v8  ;;  %v1717_v8 = vld [vmem:[%s4385_s0 + $0xe0] sm:$0xff]  ;;  %v1728_v43 = vld [vmem:[%s4385_s0 + $0x138] sm:$0xff] }
 0x1df   :  { %v836_v0 = vpop.permute.xlu1 %835 }
 0x1e0   :  { %v3065_v29 = vmul.f32 %v1710_v2, %v836_v0  ;;  %v3070_v57 = vmul.f32 %v1711_v3, %v836_v0  ;;  %v3075_v47 = vmul.f32 %v1712_v50, %v836_v0  ;;  %v3080_v10 = vmul.f32 %v1713_v31, %v836_v0  ;;  %v1729_v2 = vld [vmem:[%s4385_s0 + $0x140] sm:$0xff]  ;;  %v1730_v31 = vld [vmem:[%s4385_s0 + $0x148] sm:$0xff] }
 0x1e1   :  { %v3085_v55 = vmul.f32 %v1714_v45, %v836_v0  ;;  %v3090_v27 = vmul.f32 %v1715_v21, %v836_v0  ;;  %v3095_v56 = vmul.f32 %v1716_v25, %v836_v0  ;;  %v1731_v21 = vld [vmem:[%s4385_s0 + $0x150] sm:$0xff] }
 0x1e3   :  { %v2947_v61 = vpop.permute.xlu1 %840 }
 0x1e4   :  { %v3101_v24 = vmul.f32 %v1717_v8, %v2947_v61  ;;  %v3107_v35 = vmul.f32 %v1718_v1, %v2947_v61  ;;  %v3113_v0 = vmul.f32 %v1719_v54, %v2947_v61  ;;  %v3119_v37 = vmul.f32 %v1720_v53, %v2947_v61  ;;  %v1732_v8 = vld [vmem:[%s4385_s0 + $0x158] sm:$0xff]  ;;  %v1733_v54 = vld [vmem:[%s4385_s0 + $0x160] sm:$0xff]  ;;  %v1734_v53 = vld [vmem:[%s4385_s0 + $0x168] sm:$0xff] }
 0x1e5   :  { %v3125_v28 = vmul.f32 %v1721_v52, %v2947_v61  ;;  %v3133_v33 = vmul.f32 %v1722_v42, %v2947_v61  ;;  %v3139_v11 = vmul.f32 %v1723_v60, %v2947_v61  ;;  %v1735_v42 = vld [vmem:[%s4385_s0 + $0x170] sm:$0xff] }
 0x1e6   :  { %4597 = vst [vmem:[#allocation9_spill] sm:$0xff] %v3101_v24  ;;  %4598 = vst [vmem:[#allocation5_spill] sm:$0xff] %v3107_v35 }
 0x1e7   :  { %v2949_v5 = vpop.permute.xlu1 %845  ;;  %4599 = vst [vmem:[#allocation2_spill] sm:$0xff] %v3113_v0  ;;  %4600 = vst [vmem:[#allocation3_spill] sm:$0xff] %v3119_v37  ;;  %v1793_v0 = vld [vmem:[%s4385_s0 + $0x340] sm:$0xff] }
 0x1e8   :  { %4601 = vst [vmem:[#allocation4_spill] sm:$0xff] %v3125_v28  ;;  %4602 = vst [vmem:[#allocation6_spill] sm:$0xff] %v3133_v33  ;;  %v3145_v18 = vmul.f32 %v1724_v41, %v2949_v5  ;;  %v3151_v16 = vmul.f32 %v1725_v14, %v2949_v5  ;;  %v3157_v61 = vmul.f32 %v1726_v4, %v2949_v5  ;;  %v1736_v41 = vld [vmem:[%s4385_s0 + $0x178] sm:$0xff]  ;;  %v1737_v4 = vld [vmem:[%s4385_s0 + $0x180] sm:$0xff] }
 0x1e9   :  { %4603 = vst [vmem:[#allocation10_spill] sm:$0xff] %v3139_v11  ;;  %v3163_v34 = vmul.f32 %v1727_v39, %v2949_v5  ;;  %v3169_v17 = vmul.f32 %v1728_v43, %v2949_v5  ;;  %v3175_v3 = vmul.f32 %v1729_v2, %v2949_v5  ;;  %v3183_v45 = vmul.f32 %v1730_v31, %v2949_v5  ;;  %v1738_v43 = vld [vmem:[%s4385_s0 + $0x188] sm:$0xff]  ;;  %v1739_v31 = vld [vmem:[%s4385_s0 + $0x190] sm:$0xff]  ;;  %v1760_v11 = vld [vmem:[%s4385_s0 + $0x238] sm:$0xff] }
 0x1ea   :  { %v1761_v33 = vld [vmem:[%s4385_s0 + $0x240] sm:$0xff] }
 0x1ed   :  { %v2951_v30 = vpop.permute.xlu1 %850 }
 0x1ee   :  { %v3189_v25 = vmul.f32 %v1731_v21, %v2951_v30  ;;  %v3195_v1 = vmul.f32 %v1732_v8, %v2951_v30  ;;  %v3201_v5 = vmul.f32 %v1733_v54, %v2951_v30  ;;  %v3207_v52 = vmul.f32 %v1734_v53, %v2951_v30  ;;  %v1740_v8 = vld [vmem:[%s4385_s0 + $0x198] sm:$0xff]  ;;  %v1741_v54 = vld [vmem:[%s4385_s0 + $0x1a0] sm:$0xff] }
 0x1ef   :  { %v3213_v60 = vmul.f32 %v1735_v42, %v2951_v30  ;;  %v3219_v14 = vmul.f32 %v1736_v41, %v2951_v30  ;;  %v3225_v39 = vmul.f32 %v1737_v4, %v2951_v30  ;;  %v1742_v41 = vld [vmem:[%s4385_s0 + $0x1a8] sm:$0xff] }
 0x1f0   :  { %4604 = vst [vmem:[#allocation14_spill] sm:$0xff] %v3189_v25  ;;  %4605 = vst [vmem:[#allocation7_spill] sm:$0xff] %v3195_v1  ;;  %v1758_v1 = vld [vmem:[%s4385_s0 + $0x228] sm:$0xff]  ;;  %v1759_v25 = vld [vmem:[%s4385_s0 + $0x230] sm:$0xff] }
 0x1f1   :  { %4606 = vst [vmem:[#allocation8_spill] sm:$0xff] %v3201_v5  ;;  %4607 = vst [vmem:[#allocation11_spill] sm:$0xff] %v3207_v52 }
 0x1f2   :  { %v2953_v40 = vpop.permute.xlu1 %855  ;;  %4608 = vst [vmem:[#allocation12_spill] sm:$0xff] %v3213_v60  ;;  %4609 = vst [vmem:[#allocation17_spill] sm:$0xff] %v3219_v14  ;;  %v1746_v14 = vld [vmem:[%s4385_s0 + $0x1c8] sm:$0xff]  ;;  %v1747_v60 = vld [vmem:[%s4385_s0 + $0x1d0] sm:$0xff] }
 0x1f3   :  { %4610 = vst [vmem:[#allocation23_spill] sm:$0xff] %v3225_v39  ;;  %v3231_v2 = vmul.f32 %v1738_v43, %v2953_v40  ;;  %v3237_v21 = vmul.f32 %v1739_v31, %v2953_v40  ;;  %v3243_v30 = vmul.f32 %v1740_v8, %v2953_v40  ;;  %v3249_v53 = vmul.f32 %v1741_v54, %v2953_v40  ;;  %v1743_v43 = vld [vmem:[%s4385_s0 + $0x1b0] sm:$0xff]  ;;  %v1744_v8 = vld [vmem:[%s4385_s0 + $0x1b8] sm:$0xff]  ;;  %v1745_v39 = vld [vmem:[%s4385_s0 + $0x1c0] sm:$0xff] }
 0x1f4   :  { %v3257_v4 = vmul.f32 %v1742_v41, %v2953_v40  ;;  %v3263_v31 = vmul.f32 %v1743_v43, %v2953_v40  ;;  %v3269_v54 = vmul.f32 %v1744_v8, %v2953_v40  ;;  %v1748_v8 = vld [vmem:[%s4385_s0 + $0x1d8] sm:$0xff] }
 0x1f8   :  { %v3040_v23 = vpop.permute.xlu1 %860 }
 0x1f9   :  { %v3275_v41 = vmul.f32 %v1745_v39, %v3040_v23  ;;  %v3281_v43 = vmul.f32 %v1746_v14, %v3040_v23  ;;  %v3287_v40 = vmul.f32 %v1747_v60, %v3040_v23  ;;  %v3293_v39 = vmul.f32 %v1748_v8, %v3040_v23 }
 0x1fb   :  { %4611 = vst [vmem:[#allocation18_spill] sm:$0xff] %v3275_v41  ;;  %4612 = vst [vmem:[#allocation13_spill] sm:$0xff] %v3281_v43  ;;  %v1749_v41 = vld [vmem:[%s4385_s0 + $0x1e0] sm:$0xff]  ;;  %v1750_v43 = vld [vmem:[%s4385_s0 + $0x1f8] sm:$0xff] }
 0x1fc   :  { %4613 = vst [vmem:[#allocation15_spill] sm:$0xff] %v3287_v40  ;;  %4614 = vst [vmem:[#allocation16_spill] sm:$0xff] %v3293_v39  ;;  %v3299_v14 = vmul.f32 %v1749_v41, %v3040_v23  ;;  %v1751_v40 = vld [vmem:[%s4385_s0 + $0x200] sm:$0xff]  ;;  %v1752_v39 = vld [vmem:[%s4385_s0 + $0x1e8] sm:$0xff] }
 0x1fd   :  { %v3127_v44 = vpop.permute.xlu0 %865  ;;  %v3317_v41 = vmul.f32 %v1752_v39, %v3040_v23  ;;  %v1755_v39 = vld [vmem:[%s4385_s0 + $0x210] sm:$0xff] }
 0x1fe   :  { %4615 = vst [vmem:[#allocation19_spill] sm:$0xff] %v3299_v14  ;;  %v3305_v60 = vmul.f32 %v1750_v43, %v3127_v44  ;;  %v3311_v8 = vmul.f32 %v1751_v40, %v3127_v44  ;;  %v1753_v14 = vld [vmem:[%s4385_s0 + $0x1f0] sm:$0xff]  ;;  %v1754_v40 = vld [vmem:[%s4385_s0 + $0x208] sm:$0xff] }
 0x1ff   :  { %4616 = vst [vmem:[#allocation24_spill] sm:$0xff] %v3317_v41  ;;  %v3323_v43 = vmul.f32 %v1753_v14, %v3040_v23  ;;  %v3329_v5 = vmul.f32 %v1754_v40, %v3127_v44  ;;  %v3335_v41 = vmul.f32 %v1755_v39, %v3127_v44  ;;  %v1756_v23 = vld [vmem:[%s4385_s0 + $0x218] sm:$0xff]  ;;  %v3353_v39 = vmul.f32 %v1758_v1, %v3127_v44  ;;  %v1762_v1 = vld [vmem:[%s4385_s0 + $0x248] sm:$0xff] }
 0x200   :  { %v3341_v14 = vmul.f32 %v1756_v23, %v3127_v44 }
 0x201   :  { %4617 = vst [vmem:[#allocation29_spill] sm:$0xff] %v3323_v43  ;;  %4618 = vst [vmem:[#allocation25_spill] sm:$0xff] %v3329_v5  ;;  %v1757_v43 = vld [vmem:[%s4385_s0 + $0x220] sm:$0xff] }
 0x202   :  { %v3177_v50 = vpop.permute.xlu1 %870  ;;  %4619 = vst [vmem:[#allocation20_spill] sm:$0xff] %v3335_v41  ;;  %4620 = vst [vmem:[#allocation21_spill] sm:$0xff] %v3341_v14  ;;  %v3347_v40 = vmul.f32 %v1757_v43, %v3127_v44 }
 0x203   :  { %4622 = vst [vmem:[#allocation26_spill] sm:$0xff] %v3353_v39  ;;  %v3359_v23 = vmul.f32 %v1759_v25, %v3177_v50  ;;  %v3365_v43 = vmul.f32 %v1760_v11, %v3177_v50  ;;  %v3371_v44 = vmul.f32 %v1761_v33, %v3177_v50  ;;  %v3377_v25 = vmul.f32 %v1762_v1, %v3177_v50 }
 0x204   :  { %4621 = vst [vmem:[#allocation22_spill] sm:$0xff] %v3347_v40  ;;  %v1794_v40 = vld [vmem:[%s4385_s0 + $0x348] sm:$0xff] }
 0x205   :  { %4623 = vst [vmem:[#allocation30_spill] sm:$0xff] %v3359_v23  ;;  %4624 = vst [vmem:[#allocation32_spill] sm:$0xff] %v3365_v43  ;;  %v1763_v23 = vld [vmem:[%s4385_s0 + $0x250] sm:$0xff]  ;;  %v1764_v43 = vld [vmem:[%s4385_s0 + $0x258] sm:$0xff] }
 0x206   :  { %4625 = vst [vmem:[#allocation35_spill] sm:$0xff] %v3371_v44  ;;  %4626 = vst [vmem:[#allocation27_spill] sm:$0xff] %v3377_v25  ;;  %v3383_v11 = vmul.f32 %v1763_v23, %v3177_v50  ;;  %v3389_v33 = vmul.f32 %v1764_v43, %v3177_v50  ;;  %v1765_v44 = vld [vmem:[%s4385_s0 + $0x260] sm:$0xff]  ;;  %v1766_v25 = vld [vmem:[%s4385_s0 + $0x268] sm:$0xff] }
 0x207   :  { %v3395_v1 = vmul.f32 %v1765_v44, %v3177_v50  ;;  %v1769_v44 = vld [vmem:[%s4385_s0 + $0x280] sm:$0xff] }
 0x208   :  { %v3251_v42 = vpop.permute.xlu0 %875  ;;  %4627 = vst [vmem:[#allocation28_spill] sm:$0xff] %v3383_v11  ;;  %4628 = vst [vmem:[#allocation31_spill] sm:$0xff] %v3389_v33  ;;  %v1767_v11 = vld [vmem:[%s4385_s0 + $0x270] sm:$0xff]  ;;  %v1768_v33 = vld [vmem:[%s4385_s0 + $0x278] sm:$0xff] }
 0x209   :  { %4629 = vst [vmem:[#allocation33_spill] sm:$0xff] %v3395_v1  ;;  %v3401_v23 = vmul.f32 %v1766_v25, %v3251_v42  ;;  %v3407_v43 = vmul.f32 %v1767_v11, %v3251_v42  ;;  %v3413_v50 = vmul.f32 %v1768_v33, %v3251_v42  ;;  %v3419_v25 = vmul.f32 %v1769_v44, %v3251_v42  ;;  %v1770_v11 = vld [vmem:[%s4385_s0 + $0x288] sm:$0xff]  ;;  %v1771_v33 = vld [vmem:[%s4385_s0 + $0x290] sm:$0xff]  ;;  %v1772_v44 = vld [vmem:[%s4385_s0 + $0x298] sm:$0xff] }
 0x20b   :  { %4630 = vst [vmem:[#allocation38_spill] sm:$0xff] %v3401_v23  ;;  %4631 = vst [vmem:[#allocation39_spill] sm:$0xff] %v3407_v43  ;;  %v3425_v43 = vmul.f32 %v1770_v11, %v3251_v42  ;;  %v1773_v23 = vld [vmem:[%s4385_s0 + $0x2a0] sm:$0xff] }
 0x20c   :  { %4632 = vst [vmem:[#allocation34_spill] sm:$0xff] %v3413_v50  ;;  %4633 = vst [vmem:[#allocation36_spill] sm:$0xff] %v3419_v25  ;;  %v3431_v50 = vmul.f32 %v1771_v33, %v3251_v42  ;;  %v3437_v25 = vmul.f32 %v1772_v44, %v3251_v42  ;;  %v1775_v33 = vld [vmem:[%s4385_s0 + $0x2b0] sm:$0xff]  ;;  %v1776_v42 = vld [vmem:[%s4385_s0 + $0x2b8] sm:$0xff] }
 0x20d   :  { %v881_v52 = vpop.permute.xlu1 %880  ;;  %4634 = vst [vmem:[#allocation37_spill] sm:$0xff] %v3425_v43  ;;  %v1774_v43 = vld [vmem:[%s4385_s0 + $0x2a8] sm:$0xff] }
 0x20e   :  { %4635 = vst [vmem:[#allocation40_spill] sm:$0xff] %v3431_v50  ;;  %4636 = vst [vmem:[#allocation44_spill] sm:$0xff] %v3437_v25  ;;  %v3442_v11 = vmul.f32 %v1773_v23, %v881_v52  ;;  %v3447_v28 = vmul.f32 %v1774_v43, %v881_v52  ;;  %v3452_v50 = vmul.f32 %v1775_v33, %v881_v52  ;;  %v1777_v23 = vld [vmem:[%s4385_s0 + $0x2c0] sm:$0xff] }
 0x20f   :  { %v3457_v44 = vmul.f32 %v1776_v42, %v881_v52  ;;  %v1779_v33 = vld [vmem:[%s4385_s0 + $0x2e0] sm:$0xff]  ;;  %v1780_v42 = vld [vmem:[%s4385_s0 + $0x2c8] sm:$0xff] }
 0x210   :  { %4637 = vst [vmem:[#allocation49_spill] sm:$0xff] %v3442_v11  ;;  %4638 = vst [vmem:[#allocation45_spill] sm:$0xff] %v3447_v28  ;;  %v3462_v11 = vmul.f32 %v1777_v23, %v881_v52  ;;  %v1778_v28 = vld [vmem:[%s4385_s0 + $0x2d8] sm:$0xff]  ;;  %v1781_v23 = vld [vmem:[%s4385_s0 + $0x2d0] sm:$0xff] }
 0x211   :  { %4639 = vst [vmem:[#allocation41_spill] sm:$0xff] %v3452_v50  ;;  %4640 = vst [vmem:[#allocation42_spill] sm:$0xff] %v3457_v44  ;;  %v3477_v44 = vmul.f32 %v1780_v42, %v881_v52  ;;  %v1784_v42 = vld [vmem:[%s4385_s0 + $0x2f8] sm:$0xff] }
 0x212   :  { %v886_v1 = vpop.permute.xlu0 %885  ;;  %4641 = vst [vmem:[#allocation43_spill] sm:$0xff] %v3462_v11  ;;  %v3482_v11 = vmul.f32 %v1781_v23, %v881_v52  ;;  %v1785_v52 = vld [vmem:[%s4385_s0 + $0x300] sm:$0xff] }
 0x213   :  { %v3467_v25 = vmul.f32 %v1778_v28, %v886_v1  ;;  %v3472_v50 = vmul.f32 %v1779_v33, %v886_v1  ;;  %4644 = vst [vmem:[#allocation54_spill] sm:$0xff] %v3477_v44  ;;  %v1782_v28 = vld [vmem:[%s4385_s0 + $0x2e8] sm:$0xff]  ;;  %v1783_v33 = vld [vmem:[%s4385_s0 + $0x2f0] sm:$0xff]  ;;  %v3497_v44 = vmul.f32 %v1784_v42, %v886_v1  ;;  %v3502_v23 = vmul.f32 %v1785_v52, %v886_v1  ;;  %v1788_v52 = vld [vmem:[%s4385_s0 + $0x318] sm:$0xff] }
 0x214   :  { %4645 = vst [vmem:[#allocation47_spill] sm:$0xff] %v3482_v11  ;;  %v1787_v42 = vld [vmem:[%s4385_s0 + $0x310] sm:$0xff] }
 0x215   :  { %4642 = vst [vmem:[#allocation46_spill] sm:$0xff] %v3467_v25  ;;  %4643 = vst [vmem:[#allocation50_spill] sm:$0xff] %v3472_v50  ;;  %v3487_v25 = vmul.f32 %v1782_v28, %v886_v1  ;;  %v3492_v50 = vmul.f32 %v1783_v33, %v886_v1  ;;  %v1786_v28 = vld [vmem:[%s4385_s0 + $0x308] sm:$0xff]  ;;  %v1202_v33 = vld [vmem:[%s4388_s1] sm:$0xff] }
 0x216   :  { %4648 = vst [vmem:[#allocation52_spill] sm:$0xff] %v3497_v44  ;;  %4649 = vst [vmem:[#allocation62_spill] sm:$0xff] %v3502_v23  ;;  %v3507_v11 = vmul.f32 %v1786_v28, %v886_v1  ;;  %v1789_v1 = vld [vmem:[%s4385_s0 + $0x320] sm:$0xff] }
 0x217   :  { %v891_v43 = vpop.permute.xlu1 %890  ;;  %4646 = vst [vmem:[#allocation48_spill] sm:$0xff] %v3487_v25  ;;  %4647 = vst [vmem:[#allocation51_spill] sm:$0xff] %v3492_v50  ;;  %v1792_v25 = vld [vmem:[%s4385_s0 + $0x338] sm:$0xff] }
 0x218   :  { %4650 = vst [vmem:[#allocation57_spill] sm:$0xff] %v3507_v11  ;;  %v3515_v44 = vmul.f32 %v1787_v42, %v891_v43  ;;  %v3520_v23 = vmul.f32 %v1788_v52, %v891_v43  ;;  %v3525_v28 = vmul.f32 %v1789_v1, %v891_v43  ;;  %v1203_v11 = vld [vmem:[%s4388_s1 + $0x8] sm:$0xff]  ;;  %v1204_v42 = vld [vmem:[%s4388_s1 + $0x10] sm:$0xff]  ;;  %v3549_v37 = vmul.f32 %v1792_v25, %v891_v43 }
 0x219   :  { %v1791_v1 = vld [vmem:[%s4385_s0 + $0x330] sm:$0xff]  ;;  %v3554_v35 = vmul.f32 %v1793_v0, %v891_v43 }
 0x21a   :  { %4651 = vst [vmem:[#allocation53_spill] sm:$0xff] %v3515_v44  ;;  %4652 = vst [vmem:[#allocation55_spill] sm:$0xff] %v3520_v23  ;;  %v1205_v44 = vld [vmem:[%s4388_s1 + $0x18] sm:$0xff]  ;;  %v1790_v23 = vld [vmem:[%s4385_s0 + $0x328] sm:$0xff] }
 0x21b   :  { %4653 = vst [vmem:[#allocation56_spill] sm:$0xff] %v3525_v28  ;;  %v1013_v52 = vpop.permute.xlu1 %1012  ;;  %v3539_v50 = vmul.f32 %v1790_v23, %v891_v43  ;;  %v3544_v28 = vmul.f32 %v1791_v1, %v891_v43  ;;  %4656 = vst [vmem:[#allocation65_spill] sm:$0xff] %v3549_v37  ;;  %v1207_v1 = vld [vmem:[%s4388_s1 + $0x28] sm:$0xff]  ;;  %v1208_v25 = vld [vmem:[%s4388_s1 + $0x30] sm:$0xff] }
 0x21c   :  { %4657 = vst [vmem:[#allocation66_spill] sm:$0xff] %v3554_v35  ;;  %v3556_v23 = vpop.permute.xlu0 %895  ;;  %v1090_v37 = vadd.f32 %v1013_v52, %v2958_v26  ;;  %v1092_v0 = vadd.f32 %v1013_v52, %v2968_v62  ;;  %v1093_v43 = vadd.f32 %v1013_v52, %v2973_v7  ;;  %v1094_v35 = vadd.f32 %v1013_v52, %v2978_v38  ;;  %v1209_v62 = vld [vmem:[%s4388_s1 + $0x38] sm:$0xff]  ;;  %v1210_v7 = vld [vmem:[%s4388_s1 + $0x40] sm:$0xff] }
 0x21d   :  { %4654 = vst [vmem:[#allocation58_spill] sm:$0xff] %v3539_v50  ;;  %4655 = vst [vmem:[#allocation63_spill] sm:$0xff] %v3544_v28  ;;  %v1206_v50 = vld [vmem:[%s4388_s1 + $0x20] sm:$0xff]  ;;  %v1091_v28 = vadd.f32 %v1013_v52, %v2963_v22  ;;  %v1095_v24 = vadd.f32 %v1013_v52, %v2983_v19  ;;  %v1096_v39 = vadd.f32 %v1013_v52, %v2988_v46  ;;  %v1215_v52 = vld [vmem:[%s4388_s1 + $0x68] sm:$0xff] }
 0x21e   :  { %v3578_v14 = vmul.f32 %v1794_v40, %v3556_v23  ;;  %v1314_v26 = vadd.f32 %v1202_v33, %v1090_v37  ;;  %v1316_v22 = vadd.f32 %v1204_v42, %v1092_v0  ;;  %v1317_v5 = vadd.f32 %v1205_v44, %v1093_v43  ;;  %v1795_v40 = vld [vmem:[%s4385_s0 + $0x350] sm:$0xff]  ;;  %v1214_v42 = vld [vmem:[%s4388_s1 + $0x60] sm:$0xff] }
 0x21f   :  { %v1315_v41 = vadd.f32 %v1203_v11, %v1091_v28  ;;  %v1318_v38 = vadd.f32 %v1206_v50, %v1094_v35  ;;  %v1319_v19 = vadd.f32 %v1207_v1, %v1095_v24  ;;  %v3586_v46 = vadd.f32 %v1208_v25, %v1096_v39  ;;  %v1211_v11 = vld [vmem:[%s4388_s1 + $0x48] sm:$0xff]  ;;  %v1212_v44 = vld [vmem:[%s4388_s1 + $0x50] sm:$0xff]  ;;  %v1213_v28 = vld [vmem:[%s4388_s1 + $0x58] sm:$0xff] }
 0x220   :  { %v3592_v37 = vmul.f32 %v1795_v40, %v3556_v23  ;;  %v1018_v33 = vpop.permute.xlu0 %1017  ;;  %v1426_v35 = vmax.f32 %v1314_v26, 0.0  ;;  %v1428_v39 = vmax.f32 %v1316_v22, 0.0  ;;  %v1429_v50 = vmax.f32 %v1317_v5, 0.0 }
 0x221   :  { %v1427_v24 = vmax.f32 %v1315_v41, 0.0  ;;  %v1097_v1 = vadd.f32 %v1018_v33, %v2993_v49  ;;  %v1098_v25 = vadd.f32 %v1018_v33, %v2998_v20  ;;  %v1099_v41 = vadd.f32 %v1018_v33, %v3003_v12 }
 0x222   :  { %v1100_v5 = vadd.f32 %v1018_v33, %v3008_v63  ;;  %v1101_v0 = vadd.f32 %v1018_v33, %v3013_v59  ;;  %v1102_v43 = vadd.f32 %v1018_v33, %v3018_v51  ;;  %v1103_v26 = vadd.f32 %v1018_v33, %v3023_v15  ;;  %1538 = vst [vmem:[%s4389_s4] sm:$0xff] %v1426_v35 }
 0x223   :  { %v1430_v22 = vmax.f32 %v1318_v38, 0.0  ;;  %1539 = vst [vmem:[%s4389_s4 + $0x8] sm:$0xff] %v1427_v24  ;;  %1540 = vst [vmem:[%s4389_s4 + $0x10] sm:$0xff] %v1428_v39  ;;  %v1321_v49 = vadd.f32 %v1209_v62, %v1097_v1  ;;  %v1322_v20 = vadd.f32 %v1210_v7, %v1098_v25  ;;  %v1323_v12 = vadd.f32 %v1211_v11, %v1099_v41  ;;  %v1223_v62 = vld [vmem:[%s4388_s1 + $0xa8] sm:$0xff]  ;;  %v1224_v7 = vld [vmem:[%s4388_s1 + $0xb0] sm:$0xff] }
 0x224   :  { %1541 = vst [vmem:[%s4389_s4 + $0x18] sm:$0xff] %v1429_v50  ;;  %v1324_v63 = vadd.f32 %v1212_v44, %v1100_v5  ;;  %v1325_v59 = vadd.f32 %v1213_v28, %v1101_v0  ;;  %v1326_v51 = vadd.f32 %v1214_v42, %v1102_v43  ;;  %v1327_v15 = vadd.f32 %v1215_v52, %v1103_v26  ;;  %v1028_v38 = vpop.permute.xlu0 %1027  ;;  %v1226_v28 = vld [vmem:[%s4388_s1 + $0xc0] sm:$0xff]  ;;  %v1227_v42 = vld [vmem:[%s4388_s1 + $0xc8] sm:$0xff]  ;;  %v1229_v1 = vld [vmem:[%s4388_s1 + $0xd8] sm:$0xff] }
 0x225   :  { %v1431_v40 = vmax.f32 %v1319_v19, 0.0  ;;  %1542 = vst [vmem:[%s4389_s4 + $0x20] sm:$0xff] %v1430_v22  ;;  %v1433_v33 = vmax.f32 %v1321_v49, 0.0  ;;  %v1434_v35 = vmax.f32 %v1322_v20, 0.0  ;;  %v1435_v24 = vmax.f32 %v1323_v12, 0.0  ;;  %v1225_v19 = vld [vmem:[%s4388_s1 + $0xb8] sm:$0xff] }
 0x226   :  { %v1436_v39 = vmax.f32 %v1324_v63, 0.0  ;;  %v1437_v11 = vmax.f32 %v1325_v59, 0.0  ;;  %v1438_v44 = vmax.f32 %v1326_v51, 0.0  ;;  %v1439_v50 = vmax.f32 %v1327_v15, 0.0  ;;  %v1237_v51 = vld [vmem:[%s4388_s1 + $0x118] sm:$0xff] }
 0x227   :  { %v1111_v52 = vadd.f32 %v1028_v38, %v3065_v29  ;;  %1543 = vst [vmem:[%s4389_s4 + $0x28] sm:$0xff] %v1431_v40  ;;  %1545 = vst [vmem:[%s4389_s4 + $0x38] sm:$0xff] %v1433_v33  ;;  %v1228_v29 = vld [vmem:[%s4388_s1 + $0xd0] sm:$0xff]  ;;  %v1112_v25 = vadd.f32 %v1028_v38, %v3070_v57  ;;  %v1113_v41 = vadd.f32 %v1028_v38, %v3075_v47  ;;  %v1239_v33 = vld [vmem:[%s4388_s1 + $0x128] sm:$0xff] }
 0x228   :  { %1546 = vst [vmem:[%s4389_s4 + $0x40] sm:$0xff] %v1434_v35  ;;  %1547 = vst [vmem:[%s4389_s4 + $0x48] sm:$0xff] %v1435_v24  ;;  %v1114_v5 = vadd.f32 %v1028_v38, %v3080_v10  ;;  %v1115_v0 = vadd.f32 %v1028_v38, %v3085_v55  ;;  %v1116_v57 = vadd.f32 %v1028_v38, %v3090_v27  ;;  %v1038_v43 = vpop.permute.xlu0 %1037  ;;  %v1432_v55 = vmax.f32 %v3586_v46, 0.0  ;;  %v1238_v27 = vld [vmem:[%s4388_s1 + $0x120] sm:$0xff]  ;;  %v1240_v35 = vld [vmem:[%s4388_s1 + $0x130] sm:$0xff] }
 0x229   :  { %1548 = vst [vmem:[%s4389_s4 + $0x50] sm:$0xff] %v1436_v39  ;;  %1549 = vst [vmem:[%s4389_s4 + $0x58] sm:$0xff] %v1437_v11  ;;  %v1117_v47 = vadd.f32 %v1028_v38, %v3095_v56  ;;  %v1335_v10 = vadd.f32 %v1223_v62, %v1111_v52  ;;  %v1336_v26 = vadd.f32 %v1224_v7, %v1112_v25  ;;  %v1242_v62 = vld [vmem:[%s4388_s1 + $0x140] sm:$0xff]  ;;  %v1243_v7 = vld [vmem:[%s4388_s1 + $0x148] sm:$0xff] }
 0x22a   :  { %1550 = vst [vmem:[%s4389_s4 + $0x60] sm:$0xff] %v1438_v44  ;;  %1551 = vst.msk [vmem:[%s4389_s4 + $0x68] sm:$0xff] %vm134_vm0, %v1439_v50  ;;  %v1337_v22 = vadd.f32 %v1225_v19, %v1113_v41  ;;  %v1338_v49 = vadd.f32 %v1226_v28, %v1114_v5  ;;  %v1339_v20 = vadd.f32 %v1227_v42, %v1115_v0 }
 0x22b   :  { %v1340_v12 = vadd.f32 %v1228_v29, %v1116_v57  ;;  %v1341_v63 = vadd.f32 %v1229_v1, %v1117_v47  ;;  %v1447_v59 = vmax.f32 %v1335_v10, 0.0  ;;  %v1125_v56 = vadd.f32 %v1038_v43, %v3145_v18  ;;  %1544 = vst.msk [vmem:[%s4389_s4 + $0x30] sm:$0xff] %vm134_vm0, %v1432_v55  ;;  %v1241_v18 = vld [vmem:[%s4388_s1 + $0x138] sm:$0xff]  ;;  %v1252_v57 = vld [vmem:[%s4388_s1 + $0x190] sm:$0xff] }
 0x22c   :  { %v1448_v46 = vmax.f32 %v1336_v26, 0.0  ;;  %v1449_v15 = vmax.f32 %v1337_v22, 0.0  ;;  %v1450_v38 = vmax.f32 %v1338_v49, 0.0  ;;  %v1451_v40 = vmax.f32 %v1339_v20, 0.0  ;;  %v1048_v50 = vpop.permute.xlu0 %1047  ;;  %v1253_v47 = vld [vmem:[%s4388_s1 + $0x198] sm:$0xff]  ;;  %v1255_v20 = vld [vmem:[%s4388_s1 + $0x1a8] sm:$0xff] }
 0x22d   :  { %v1452_v24 = vmax.f32 %v1340_v12, 0.0  ;;  %v1453_v39 = vmax.f32 %v1341_v63, 0.0  ;;  %1559 = vst [vmem:[%s4389_s4 + $0xa8] sm:$0xff] %v1447_v59  ;;  %v1126_v11 = vadd.f32 %v1038_v43, %v3151_v16  ;;  %v1127_v44 = vadd.f32 %v1038_v43, %v3157_v61  ;;  %v1256_v12 = vld [vmem:[%s4388_s1 + $0x1b0] sm:$0xff] }
 0x22e   :  { %1560 = vst [vmem:[%s4389_s4 + $0xb0] sm:$0xff] %v1448_v46  ;;  %1561 = vst [vmem:[%s4389_s4 + $0xb8] sm:$0xff] %v1449_v15  ;;  %v1128_v16 = vadd.f32 %v1038_v43, %v3163_v34  ;;  %v1129_v61 = vadd.f32 %v1038_v43, %v3169_v17  ;;  %v1130_v19 = vadd.f32 %v1038_v43, %v3175_v3 }
 0x22f   :  { %1562 = vst [vmem:[%s4389_s4 + $0xc0] sm:$0xff] %v1450_v38  ;;  %1563 = vst [vmem:[%s4389_s4 + $0xc8] sm:$0xff] %v1451_v40  ;;  %v1131_v28 = vadd.f32 %v1038_v43, %v3183_v45  ;;  %v1349_v42 = vadd.f32 %v1237_v51, %v1125_v56  ;;  %v1350_v52 = vadd.f32 %v1238_v27, %v1126_v11  ;;  %v1251_v45 = vld [vmem:[%s4388_s1 + $0x188] sm:$0xff]  ;;  %v1023_v43 = vpop.permute.xlu1 %1022 }
 0x230   :  { %1564 = vst [vmem:[%s4389_s4 + $0xd0] sm:$0xff] %v1452_v24  ;;  %1565 = vst.msk [vmem:[%s4389_s4 + $0xd8] sm:$0xff] %vm134_vm0, %v1453_v39  ;;  %v1351_v29 = vadd.f32 %v1239_v33, %v1127_v44  ;;  %v1139_v34 = vadd.f32 %v1048_v50, %v3231_v2  ;;  %v1352_v1 = vadd.f32 %v1240_v35, %v1128_v16  ;;  %v1254_v2 = vld [vmem:[%s4388_s1 + $0x1a0] sm:$0xff]  ;;  %v1216_v24 = vld [vmem:[%s4388_s1 + $0x70] sm:$0xff]  ;;  %v1058_v16 = vpop.permute.xlu0 %1057 }
 0x231   :  { %v1353_v17 = vadd.f32 %v1241_v18, %v1129_v61  ;;  %v1354_v25 = vadd.f32 %v1242_v62, %v1130_v19  ;;  %v1355_v3 = vadd.f32 %v1243_v7, %v1131_v28  ;;  %v1461_v41 = vmax.f32 %v1349_v42, 0.0  ;;  %v1217_v39 = vld [vmem:[%s4388_s1 + $0x78] sm:$0xff]  ;;  %v1219_v44 = vld [vmem:[%s4388_s1 + $0x88] sm:$0xff]  ;;  %v1222_v19 = vld [vmem:[%s4388_s1 + $0xa0] sm:$0xff] }
 0x232   :  { %v1462_v5 = vmax.f32 %v1350_v52, 0.0  ;;  %v1463_v0 = vmax.f32 %v1351_v29, 0.0  ;;  %v1140_v10 = vadd.f32 %v1048_v50, %v3237_v21  ;;  %v1464_v55 = vmax.f32 %v1352_v1, 0.0  ;;  %v1257_v21 = vld [vmem:[%s4388_s1 + $0x1b8] sm:$0xff] }
 0x233   :  { %v1465_v26 = vmax.f32 %v1353_v17, 0.0  ;;  %v1466_v22 = vmax.f32 %v1354_v25, 0.0  ;;  %v1467_v49 = vmax.f32 %v1355_v3, 0.0  ;;  %1573 = vst [vmem:[%s4389_s4 + $0x118] sm:$0xff] %v1461_v41  ;;  %v1141_v63 = vadd.f32 %v1048_v50, %v3243_v30 }
 0x234   :  { %1574 = vst [vmem:[%s4389_s4 + $0x120] sm:$0xff] %v1462_v5  ;;  %1575 = vst [vmem:[%s4389_s4 + $0x128] sm:$0xff] %v1463_v0  ;;  %v1142_v59 = vadd.f32 %v1048_v50, %v3249_v53  ;;  %v1143_v51 = vadd.f32 %v1048_v50, %v3257_v4  ;;  %v1144_v27 = vadd.f32 %v1048_v50, %v3263_v31 }
 0x235   :  { %1576 = vst [vmem:[%s4389_s4 + $0x130] sm:$0xff] %v1464_v55  ;;  %1577 = vst [vmem:[%s4389_s4 + $0x138] sm:$0xff] %v1465_v26  ;;  %v1145_v30 = vadd.f32 %v1048_v50, %v3269_v54  ;;  %v1363_v53 = vadd.f32 %v1251_v45, %v1139_v34  ;;  %v1364_v4 = vadd.f32 %v1252_v57, %v1140_v10  ;;  %v1218_v54 = vld [vmem:[%s4388_s1 + $0x80] sm:$0xff]  ;;  %v1220_v50 = vld [vmem:[%s4388_s1 + $0x90] sm:$0xff] }
 0x236   :  { %1578 = vst [vmem:[%s4389_s4 + $0x140] sm:$0xff] %v1466_v22  ;;  %1579 = vst.msk [vmem:[%s4389_s4 + $0x148] sm:$0xff] %vm134_vm0, %v1467_v49  ;;  %v1104_v31 = vadd.f32 %v1023_v43, %v3028_v48  ;;  %v1365_v56 = vadd.f32 %v1253_v47, %v1141_v63  ;;  %v1366_v46 = vadd.f32 %v1254_v2, %v1142_v59  ;;  %v1266_v47 = vld [vmem:[%s4388_s1 + $0x200] sm:$0xff]  ;;  %v1267_v2 = vld [vmem:[%s4388_s1 + $0x208] sm:$0xff] }
 0x237   :  { %v1367_v15 = vadd.f32 %v1255_v20, %v1143_v51  ;;  %v1368_v38 = vadd.f32 %v1256_v12, %v1144_v27  ;;  %v1369_v40 = vadd.f32 %v1257_v21, %v1145_v30  ;;  %v1475_v33 = vmax.f32 %v1363_v53, 0.0  ;;  %v1269_v22 = vld [vmem:[%s4388_s1 + $0x218] sm:$0xff]  ;;  %v1270_v49 = vld [vmem:[%s4388_s1 + $0x220] sm:$0xff]  ;;  %v4659_v21 = vld [vmem:[#allocation20_spill] sm:$0xff] }
 0x238   :  { %v1476_v35 = vmax.f32 %v1364_v4, 0.0  ;;  %v1105_v48 = vadd.f32 %v1023_v43, %v3033_v58  ;;  %v1477_v18 = vmax.f32 %v1365_v56, 0.0  ;;  %v1478_v62 = vmax.f32 %v1366_v46, 0.0  ;;  %v1221_v58 = vld [vmem:[%s4388_s1 + $0x98] sm:$0xff]  ;;  %v4661_v27 = vld [vmem:[#allocation22_spill] sm:$0xff] }
 0x239   :  { %v1479_v7 = vmax.f32 %v1367_v15, 0.0  ;;  %v1480_v11 = vmax.f32 %v1368_v38, 0.0  ;;  %v1481_v61 = vmax.f32 %v1369_v40, 0.0  ;;  %1587 = vst [vmem:[%s4389_s4 + $0x188] sm:$0xff] %v1475_v33  ;;  %v1106_v28 = vadd.f32 %v1023_v43, %v3038_v6  ;;  %v4658_v20 = vld [vmem:[#allocation25_spill] sm:$0xff]  ;;  %v4662_v53 = vld [vmem:[#allocation26_spill] sm:$0xff] }
 0x23a   :  { %1588 = vst [vmem:[%s4389_s4 + $0x190] sm:$0xff] %v1476_v35  ;;  %v1107_v42 = vadd.f32 %v1023_v43, %v3045_v32  ;;  %v1108_v52 = vadd.f32 %v1023_v43, %v3050_v9  ;;  %1589 = vst [vmem:[%s4389_s4 + $0x198] sm:$0xff] %v1477_v18  ;;  %v1109_v6 = vadd.f32 %v1023_v43, %v3055_v13  ;;  %v1265_v13 = vld [vmem:[%s4388_s1 + $0x1f8] sm:$0xff] }
 0x23b   :  { %1590 = vst [vmem:[%s4389_s4 + $0x1a0] sm:$0xff] %v1478_v62  ;;  %1591 = vst [vmem:[%s4389_s4 + $0x1a8] sm:$0xff] %v1479_v7  ;;  %v1110_v32 = vadd.f32 %v1023_v43, %v3060_v36  ;;  %v1328_v9 = vadd.f32 %v1216_v24, %v1104_v31  ;;  %v1329_v29 = vadd.f32 %v1217_v39, %v1105_v48  ;;  %v1033_v43 = vpop.permute.xlu1 %1032  ;;  %v4660_v59 = vld [vmem:[#allocation21_spill] sm:$0xff]  ;;  %v1231_v7 = vld [vmem:[%s4388_s1 + $0xe8] sm:$0xff] }
 0x23c   :  { %1592 = vst [vmem:[%s4389_s4 + $0x1b0] sm:$0xff] %v1480_v11  ;;  %1593 = vst.msk [vmem:[%s4389_s4 + $0x1b8] sm:$0xff] %vm134_vm0, %v1481_v61  ;;  %v1330_v34 = vadd.f32 %v1218_v54, %v1106_v28  ;;  %v1331_v1 = vadd.f32 %v1219_v44, %v1107_v42  ;;  %v1332_v17 = vadd.f32 %v1220_v50, %v1108_v52  ;;  %v4663_v38 = vld [vmem:[#allocation9_spill] sm:$0xff]  ;;  %v1230_v54 = vld [vmem:[%s4388_s1 + $0xe0] sm:$0xff]  ;;  %v1068_v61 = vpop.permute.xlu0 %1067 }
 0x23d   :  { %v1153_v25 = vadd.f32 %v1058_v16, %v3305_v60  ;;  %v1333_v3 = vadd.f32 %v1221_v58, %v1109_v6  ;;  %v1334_v45 = vadd.f32 %v1222_v19, %v1110_v32  ;;  %v1440_v41 = vmax.f32 %v1328_v9, 0.0  ;;  %v1268_v60 = vld [vmem:[%s4388_s1 + $0x210] sm:$0xff]  ;;  %v1233_v44 = vld [vmem:[%s4388_s1 + $0xf8] sm:$0xff]  ;;  %v1234_v42 = vld [vmem:[%s4388_s1 + $0x100] sm:$0xff] }
 0x23e   :  { %v1441_v5 = vmax.f32 %v1329_v29, 0.0  ;;  %v1442_v36 = vmax.f32 %v1330_v34, 0.0  ;;  %v1443_v0 = vmax.f32 %v1331_v1, 0.0  ;;  %v1444_v57 = vmax.f32 %v1332_v17, 0.0  ;;  %v1232_v11 = vld [vmem:[%s4388_s1 + $0xf0] sm:$0xff]  ;;  %v4664_v50 = vld [vmem:[#allocation5_spill] sm:$0xff] }
 0x23f   :  { %v1154_v10 = vadd.f32 %v1058_v16, %v3311_v8  ;;  %v1445_v55 = vmax.f32 %v1333_v3, 0.0  ;;  %v1446_v26 = vmax.f32 %v1334_v45, 0.0  ;;  %1552 = vst [vmem:[%s4389_s4 + $0x70] sm:$0xff] %v1440_v41  ;;  %v1271_v8 = vld [vmem:[%s4388_s1 + $0x228] sm:$0xff]  ;;  %v1155_v12 = vadd.f32 %v1058_v16, %v4658_v20  ;;  %v1236_v6 = vld [vmem:[%s4388_s1 + $0x110] sm:$0xff]  ;;  %v4665_v32 = vld [vmem:[#allocation2_spill] sm:$0xff] }
 0x240   :  { %1553 = vst [vmem:[%s4389_s4 + $0x78] sm:$0xff] %v1441_v5  ;;  %v1156_v63 = vadd.f32 %v1058_v16, %v4659_v21  ;;  %1554 = vst [vmem:[%s4389_s4 + $0x80] sm:$0xff] %v1442_v36  ;;  %v1157_v51 = vadd.f32 %v1058_v16, %v4660_v59  ;;  %v1158_v30 = vadd.f32 %v1058_v16, %v4661_v27  ;;  %v1235_v52 = vld [vmem:[%s4388_s1 + $0x108] sm:$0xff]  ;;  %v4667_v1 = vld [vmem:[#allocation4_spill] sm:$0xff] }
 0x241   :  { %1555 = vst [vmem:[%s4389_s4 + $0x88] sm:$0xff] %v1443_v0  ;;  %1556 = vst [vmem:[%s4389_s4 + $0x90] sm:$0xff] %v1444_v57  ;;  %v1159_v4 = vadd.f32 %v1058_v16, %v4662_v53  ;;  %v1377_v31 = vadd.f32 %v1265_v13, %v1153_v25  ;;  %v1378_v56 = vadd.f32 %v1266_v47, %v1154_v10  ;;  %v4666_v29 = vld [vmem:[#allocation3_spill] sm:$0xff]  ;;  %v4668_v25 = vld [vmem:[#allocation6_spill] sm:$0xff] }
 0x242   :  { %1557 = vst [vmem:[%s4389_s4 + $0x98] sm:$0xff] %v1445_v55  ;;  %1558 = vst.msk [vmem:[%s4389_s4 + $0xa0] sm:$0xff] %vm134_vm0, %v1446_v26  ;;  %v1379_v46 = vadd.f32 %v1267_v2, %v1155_v12  ;;  %v1380_v15 = vadd.f32 %v1268_v60, %v1156_v63  ;;  %v1118_v40 = vadd.f32 %v1033_v43, %v4663_v38  ;;  %v4669_v45 = vld [vmem:[#allocation10_spill] sm:$0xff]  ;;  %v4671_v12 = vld [vmem:[#allocation39_spill] sm:$0xff]  ;;  %v1043_v63 = vpop.permute.xlu1 %1042 }
 0x243   :  { %v1381_v33 = vadd.f32 %v1269_v22, %v1157_v51  ;;  %v1382_v35 = vadd.f32 %v1270_v49, %v1158_v30  ;;  %v1383_v24 = vadd.f32 %v1271_v8, %v1159_v4  ;;  %v1489_v39 = vmax.f32 %v1377_v31, 0.0  ;;  %v4670_v0 = vld [vmem:[#allocation38_spill] sm:$0xff]  ;;  %v1280_v49 = vld [vmem:[%s4388_s1 + $0x270] sm:$0xff]  ;;  %v1281_v8 = vld [vmem:[%s4388_s1 + $0x278] sm:$0xff] }
 0x244   :  { %v1490_v48 = vmax.f32 %v1378_v56, 0.0  ;;  %v1491_v18 = vmax.f32 %v1379_v46, 0.0  ;;  %v1492_v62 = vmax.f32 %v1380_v15, 0.0  ;;  %v1119_v16 = vadd.f32 %v1033_v43, %v4664_v50  ;;  %v1282_v20 = vld [vmem:[%s4388_s1 + $0x280] sm:$0xff]  ;;  %v1283_v53 = vld [vmem:[%s4388_s1 + $0x288] sm:$0xff]  ;;  %v1284_v4 = vld [vmem:[%s4388_s1 + $0x290] sm:$0xff] }
 0x245   :  { %v1493_v58 = vmax.f32 %v1381_v33, 0.0  ;;  %v1494_v19 = vmax.f32 %v1382_v35, 0.0  ;;  %v1495_v28 = vmax.f32 %v1383_v24, 0.0  ;;  %1601 = vst [vmem:[%s4389_s4 + $0x1f8] sm:$0xff] %v1489_v39  ;;  %v1120_v9 = vadd.f32 %v1033_v43, %v4665_v32  ;;  %v1285_v31 = vld [vmem:[%s4388_s1 + $0x298] sm:$0xff]  ;;  %v4672_v56 = vld [vmem:[#allocation34_spill] sm:$0xff] }
 0x246   :  { %1602 = vst [vmem:[%s4389_s4 + $0x200] sm:$0xff] %v1490_v48  ;;  %1603 = vst [vmem:[%s4389_s4 + $0x208] sm:$0xff] %v1491_v18  ;;  %v1121_v34 = vadd.f32 %v1033_v43, %v4666_v29  ;;  %v1122_v17 = vadd.f32 %v1033_v43, %v4667_v1  ;;  %v1123_v3 = vadd.f32 %v1033_v43, %v4668_v25  ;;  %v4673_v15 = vld [vmem:[#allocation36_spill] sm:$0xff] }
 0x247   :  { %1604 = vst [vmem:[%s4389_s4 + $0x210] sm:$0xff] %v1492_v62  ;;  %v1124_v41 = vadd.f32 %v1033_v43, %v4669_v45  ;;  %1605 = vst [vmem:[%s4389_s4 + $0x218] sm:$0xff] %v1493_v58  ;;  %v1342_v5 = vadd.f32 %v1230_v54, %v1118_v40  ;;  %v1343_v13 = vadd.f32 %v1231_v7, %v1119_v16  ;;  %v1279_v43 = vld [vmem:[%s4388_s1 + $0x268] sm:$0xff]  ;;  %v4674_v40 = vld [vmem:[#allocation37_spill] sm:$0xff] }
 0x248   :  { %1606 = vst [vmem:[%s4389_s4 + $0x220] sm:$0xff] %v1494_v19  ;;  %1607 = vst.msk [vmem:[%s4389_s4 + $0x228] sm:$0xff] %vm134_vm0, %v1495_v28  ;;  %v1344_v36 = vadd.f32 %v1232_v11, %v1120_v9  ;;  %v1167_v57 = vadd.f32 %v1068_v61, %v4670_v0  ;;  %v1345_v47 = vadd.f32 %v1233_v44, %v1121_v34  ;;  %v4675_v35 = vld [vmem:[#allocation40_spill] sm:$0xff]  ;;  %v4677_v62 = vld [vmem:[#allocation14_spill] sm:$0xff] }
 0x249   :  { %v1346_v2 = vadd.f32 %v1234_v42, %v1122_v17  ;;  %v1347_v60 = vadd.f32 %v1235_v52, %v1123_v3  ;;  %v1348_v10 = vadd.f32 %v1236_v6, %v1124_v41  ;;  %v1454_v55 = vmax.f32 %v1342_v5, 0.0  ;;  %v4676_v39 = vld [vmem:[#allocation44_spill] sm:$0xff]  ;;  %v1245_v52 = vld [vmem:[%s4388_s1 + $0x158] sm:$0xff]  ;;  %v4678_v6 = vld [vmem:[#allocation7_spill] sm:$0xff]  ;;  %v1078_v3 = vpop.permute.xlu0 %1077 }
 0x24a   :  { %v1455_v26 = vmax.f32 %v1343_v13, 0.0  ;;  %v1456_v22 = vmax.f32 %v1344_v36, 0.0  ;;  %v1168_v21 = vadd.f32 %v1068_v61, %v4671_v12  ;;  %v1457_v59 = vmax.f32 %v1345_v47, 0.0  ;;  %v1244_v42 = vld [vmem:[%s4388_s1 + $0x150] sm:$0xff]  ;;  %v1247_v17 = vld [vmem:[%s4388_s1 + $0x168] sm:$0xff]  ;;  %v1249_v41 = vld [vmem:[%s4388_s1 + $0x178] sm:$0xff] }
 0x24b   :  { %v1458_v51 = vmax.f32 %v1346_v2, 0.0  ;;  %v1459_v27 = vmax.f32 %v1347_v60, 0.0  ;;  %v1460_v30 = vmax.f32 %v1348_v10, 0.0  ;;  %1566 = vst [vmem:[%s4389_s4 + $0xe0] sm:$0xff] %v1454_v55  ;;  %v1169_v46 = vadd.f32 %v1068_v61, %v4672_v56  ;;  %v1248_v25 = vld [vmem:[%s4388_s1 + $0x170] sm:$0xff]  ;;  %v1250_v5 = vld [vmem:[%s4388_s1 + $0x180] sm:$0xff] }
 0x24c   :  { %1567 = vst [vmem:[%s4389_s4 + $0xe8] sm:$0xff] %v1455_v26  ;;  %1568 = vst [vmem:[%s4389_s4 + $0xf0] sm:$0xff] %v1456_v22  ;;  %v1170_v38 = vadd.f32 %v1068_v61, %v4673_v15  ;;  %v1171_v33 = vadd.f32 %v1068_v61, %v4674_v40  ;;  %v1172_v24 = vadd.f32 %v1068_v61, %v4675_v35  ;;  %v4679_v13 = vld [vmem:[#allocation8_spill] sm:$0xff]  ;;  %v4680_v0 = vld [vmem:[#allocation11_spill] sm:$0xff] }
 0x24d   :  { %1569 = vst [vmem:[%s4389_s4 + $0xf8] sm:$0xff] %v1457_v59  ;;  %1570 = vst [vmem:[%s4389_s4 + $0x100] sm:$0xff] %v1458_v51  ;;  %v1173_v54 = vadd.f32 %v1068_v61, %v4676_v39  ;;  %v1391_v48 = vadd.f32 %v1279_v43, %v1167_v57  ;;  %v1392_v18 = vadd.f32 %v1280_v49, %v1168_v21  ;;  %v1246_v61 = vld [vmem:[%s4388_s1 + $0x160] sm:$0xff]  ;;  %v4681_v47 = vld [vmem:[#allocation12_spill] sm:$0xff] }
 0x24e   :  { %1571 = vst [vmem:[%s4389_s4 + $0x108] sm:$0xff] %v1459_v27  ;;  %1572 = vst.msk [vmem:[%s4389_s4 + $0x110] sm:$0xff] %vm134_vm0, %v1460_v30  ;;  %v1132_v7 = vadd.f32 %v1043_v63, %v4677_v62  ;;  %v1393_v11 = vadd.f32 %v1281_v8, %v1169_v46  ;;  %v1394_v44 = vadd.f32 %v1282_v20, %v1170_v38  ;;  %v4682_v60 = vld [vmem:[#allocation17_spill] sm:$0xff]  ;;  %v4683_v43 = vld [vmem:[#allocation23_spill] sm:$0xff] }
 0x24f   :  { %v1395_v50 = vadd.f32 %v1283_v53, %v1171_v33  ;;  %v1396_v16 = vadd.f32 %v1284_v4, %v1172_v24  ;;  %v1397_v58 = vadd.f32 %v1285_v31, %v1173_v54  ;;  %v1503_v19 = vmax.f32 %v1391_v48, 0.0  ;;  %v4684_v12 = vld [vmem:[#allocation46_spill] sm:$0xff]  ;;  %v1295_v46 = vld [vmem:[%s4388_s1 + $0x2e8] sm:$0xff]  ;;  %v1296_v15 = vld [vmem:[%s4388_s1 + $0x2f0] sm:$0xff]  ;;  %v1053_v33 = vpop.permute.xlu1 %1052 }
 0x250   :  { %v1504_v28 = vmax.f32 %v1392_v18, 0.0  ;;  %v1133_v32 = vadd.f32 %v1043_v63, %v4678_v6  ;;  %v1505_v9 = vmax.f32 %v1393_v11, 0.0  ;;  %v1506_v29 = vmax.f32 %v1394_v44, 0.0  ;;  %v1294_v56 = vld [vmem:[%s4388_s1 + $0x2e0] sm:$0xff]  ;;  %v1297_v39 = vld [vmem:[%s4388_s1 + $0x2f8] sm:$0xff]  ;;  %v1299_v48 = vld [vmem:[%s4388_s1 + $0x308] sm:$0xff] }
 0x251   :  { %v1507_v34 = vmax.f32 %v1395_v50, 0.0  ;;  %v1508_v1 = vmax.f32 %v1396_v16, 0.0  ;;  %v1509_v45 = vmax.f32 %v1397_v58, 0.0  ;;  %1615 = vst [vmem:[%s4389_s4 + $0x268] sm:$0xff] %v1503_v19  ;;  %v1134_v36 = vadd.f32 %v1043_v63, %v4679_v13  ;;  %v4685_v38 = vld [vmem:[#allocation50_spill] sm:$0xff]  ;;  %v4686_v18 = vld [vmem:[#allocation48_spill] sm:$0xff] }
 0x252   :  { %1616 = vst [vmem:[%s4389_s4 + $0x270] sm:$0xff] %v1504_v28  ;;  %v1135_v57 = vadd.f32 %v1043_v63, %v4680_v0  ;;  %v1136_v2 = vadd.f32 %v1043_v63, %v4681_v47  ;;  %1617 = vst [vmem:[%s4389_s4 + $0x278] sm:$0xff] %v1505_v9  ;;  %v1137_v10 = vadd.f32 %v1043_v63, %v4682_v60  ;;  %v1298_v54 = vld [vmem:[%s4388_s1 + $0x300] sm:$0xff]  ;;  %v4688_v44 = vld [vmem:[#allocation52_spill] sm:$0xff] }
 0x253   :  { %1618 = vst [vmem:[%s4389_s4 + $0x280] sm:$0xff] %v1506_v29  ;;  %1619 = vst [vmem:[%s4389_s4 + $0x288] sm:$0xff] %v1507_v34  ;;  %v1138_v55 = vadd.f32 %v1043_v63, %v4683_v43  ;;  %v1356_v26 = vadd.f32 %v1244_v42, %v1132_v7  ;;  %v1357_v22 = vadd.f32 %v1245_v52, %v1133_v32  ;;  %v1293_v63 = vld [vmem:[%s4388_s1 + $0x2d8] sm:$0xff]  ;;  %v4687_v7 = vld [vmem:[#allocation51_spill] sm:$0xff] }
 0x254   :  { %1620 = vst [vmem:[%s4389_s4 + $0x290] sm:$0xff] %v1508_v1  ;;  %1621 = vst.msk [vmem:[%s4389_s4 + $0x298] sm:$0xff] %vm134_vm0, %v1509_v45  ;;  %v1358_v49 = vadd.f32 %v1246_v61, %v1134_v36  ;;  %v1359_v8 = vadd.f32 %v1247_v17, %v1135_v57  ;;  %v1360_v20 = vadd.f32 %v1248_v25, %v1136_v2  ;;  %v4689_v16 = vld [vmem:[#allocation62_spill] sm:$0xff]  ;;  %v4690_v19 = vld [vmem:[#allocation57_spill] sm:$0xff] }
 0x255   :  { %v1181_v21 = vadd.f32 %v1078_v3, %v4684_v12  ;;  %v1361_v59 = vadd.f32 %v1249_v41, %v1137_v10  ;;  %v1362_v51 = vadd.f32 %v1250_v5, %v1138_v55  ;;  %v1468_v27 = vmax.f32 %v1356_v26, 0.0  ;;  %v4691_v32 = vld [vmem:[#allocation18_spill] sm:$0xff]  ;;  %v1259_v5 = vld [vmem:[%s4388_s1 + $0x1c8] sm:$0xff]  ;;  %v1260_v13 = vld [vmem:[%s4388_s1 + $0x1d0] sm:$0xff] }
 0x256   :  { %v1469_v30 = vmax.f32 %v1357_v22, 0.0  ;;  %v1470_v53 = vmax.f32 %v1358_v49, 0.0  ;;  %v1471_v4 = vmax.f32 %v1359_v8, 0.0  ;;  %v1472_v31 = vmax.f32 %v1360_v20, 0.0  ;;  %v1258_v25 = vld [vmem:[%s4388_s1 + $0x1c0] sm:$0xff]  ;;  %v1261_v36 = vld [vmem:[%s4388_s1 + $0x1d8] sm:$0xff] }
 0x257   :  { %v1182_v40 = vadd.f32 %v1078_v3, %v4685_v38  ;;  %v1473_v35 = vmax.f32 %v1361_v59, 0.0  ;;  %v1474_v24 = vmax.f32 %v1362_v51, 0.0  ;;  %1580 = vst [vmem:[%s4389_s4 + $0x150] sm:$0xff] %v1468_v27  ;;  %v1183_v62 = vadd.f32 %v1078_v3, %v4686_v18  ;;  %v4692_v0 = vld [vmem:[#allocation13_spill] sm:$0xff]  ;;  %v1262_v10 = vld [vmem:[%s4388_s1 + $0x1e0] sm:$0xff]  ;;  %v1263_v43 = vld [vmem:[%s4388_s1 + $0x1e8] sm:$0xff] }
 0x258   :  { %1581 = vst [vmem:[%s4389_s4 + $0x158] sm:$0xff] %v1469_v30  ;;  %v1184_v11 = vadd.f32 %v1078_v3, %v4687_v7  ;;  %1582 = vst [vmem:[%s4389_s4 + $0x160] sm:$0xff] %v1470_v53  ;;  %v1185_v50 = vadd.f32 %v1078_v3, %v4688_v44  ;;  %v1186_v58 = vadd.f32 %v1078_v3, %v4689_v16  ;;  %v1264_v55 = vld [vmem:[%s4388_s1 + $0x1f0] sm:$0xff]  ;;  %v4693_v26 = vld [vmem:[#allocation15_spill] sm:$0xff] }
 0x259   :  { %1583 = vst [vmem:[%s4389_s4 + $0x168] sm:$0xff] %v1471_v4  ;;  %1584 = vst [vmem:[%s4389_s4 + $0x170] sm:$0xff] %v1472_v31  ;;  %v1187_v28 = vadd.f32 %v1078_v3, %v4690_v19  ;;  %v1405_v42 = vadd.f32 %v1293_v63, %v1181_v21  ;;  %v1406_v52 = vadd.f32 %v1294_v56, %v1182_v40  ;;  %v4694_v49 = vld [vmem:[#allocation16_spill] sm:$0xff]  ;;  %v4695_v20 = vld [vmem:[#allocation19_spill] sm:$0xff]  ;;  %v1088_v40 = vpop.permute.xlu0 %1087 }
 0x25a   :  { %1585 = vst [vmem:[%s4389_s4 + $0x178] sm:$0xff] %v1473_v35  ;;  %1586 = vst.msk [vmem:[%s4389_s4 + $0x180] sm:$0xff] %vm134_vm0, %v1474_v24  ;;  %v1407_v61 = vadd.f32 %v1295_v46, %v1183_v62  ;;  %v1408_v6 = vadd.f32 %v1296_v15, %v1184_v11  ;;  %v1146_v9 = vadd.f32 %v1053_v33, %v4691_v32  ;;  %v4696_v21 = vld [vmem:[#allocation24_spill] sm:$0xff]  ;;  %v4697_v51 = vld [vmem:[#allocation29_spill] sm:$0xff] }
 0x25b   :  { %v1409_v29 = vadd.f32 %v1297_v39, %v1185_v50  ;;  %v1410_v34 = vadd.f32 %v1298_v54, %v1186_v58  ;;  %v1411_v1 = vadd.f32 %v1299_v48, %v1187_v28  ;;  %v1517_v17 = vmax.f32 %v1405_v42, 0.0  ;;  %v1796_v4 = vld [vmem:[%s4385_s0 + $0x358] sm:$0xff]  ;;  %v1797_v39 = vld [vmem:[%s4385_s0 + $0x360] sm:$0xff]  ;;  %v4147_v48 = vpop.permute.xlu1 %1062  ;;  %v1307_v44 = vld [vmem:[%s4388_s1 + $0x348] sm:$0xff] }
 0x25c   :  { %v1518_v3 = vmax.f32 %v1406_v52, 0.0  ;;  %v1519_v45 = vmax.f32 %v1407_v61, 0.0  ;;  %v1520_v41 = vmax.f32 %v1408_v6, 0.0  ;;  %v1147_v57 = vadd.f32 %v1053_v33, %v4692_v0  ;;  %v1798_v50 = vld [vmem:[%s4385_s0 + $0x368] sm:$0xff]  ;;  %v1799_v58 = vld [vmem:[%s4385_s0 + $0x370] sm:$0xff]  ;;  %v1800_v28 = vld [vmem:[%s4385_s0 + $0x378] sm:$0xff] }
 0x25d   :  { %v1521_v47 = vmax.f32 %v1409_v29, 0.0  ;;  %v1522_v2 = vmax.f32 %v1410_v34, 0.0  ;;  %v1523_v60 = vmax.f32 %v1411_v1, 0.0  ;;  %1629 = vst [vmem:[%s4389_s4 + $0x2d8] sm:$0xff] %v1517_v17  ;;  %v1148_v22 = vadd.f32 %v1053_v33, %v4693_v26  ;;  %v1308_v52 = vld [vmem:[%s4388_s1 + $0x350] sm:$0xff]  ;;  %v1309_v61 = vld [vmem:[%s4388_s1 + $0x358] sm:$0xff] }
 0x25e   :  { %1630 = vst [vmem:[%s4389_s4 + $0x2e0] sm:$0xff] %v1518_v3  ;;  %1631 = vst [vmem:[%s4389_s4 + $0x2e8] sm:$0xff] %v1519_v45  ;;  %v1149_v8 = vadd.f32 %v1053_v33, %v4694_v49  ;;  %v1150_v12 = vadd.f32 %v1053_v33, %v4695_v20  ;;  %v1151_v59 = vadd.f32 %v1053_v33, %v4696_v21  ;;  %v1310_v6 = vld [vmem:[%s4388_s1 + $0x360] sm:$0xff]  ;;  %v4700_v21 = vld [vmem:[#allocation35_spill] sm:$0xff] }
 0x25f   :  { %1632 = vst [vmem:[%s4389_s4 + $0x2f0] sm:$0xff] %v1520_v41  ;;  %v1152_v27 = vadd.f32 %v1053_v33, %v4697_v51  ;;  %1633 = vst [vmem:[%s4389_s4 + $0x2f8] sm:$0xff] %v1521_v47  ;;  %v1370_v30 = vadd.f32 %v1258_v25, %v1146_v9  ;;  %v1371_v63 = vadd.f32 %v1259_v5, %v1147_v57  ;;  %v1313_v9 = vld [vmem:[%s4388_s1 + $0x378] sm:$0xff]  ;;  %v4698_v17 = vld [vmem:[#allocation30_spill] sm:$0xff] }
 0x260   :  { %1634 = vst [vmem:[%s4389_s4 + $0x300] sm:$0xff] %v1522_v2  ;;  %1635 = vst.msk [vmem:[%s4389_s4 + $0x308] sm:$0xff] %vm134_vm0, %v1523_v60  ;;  %v1372_v53 = vadd.f32 %v1260_v13, %v1148_v22  ;;  %v1005_v31 = vmul.f32 %v1796_v4, %v3556_v23  ;;  %v1373_v56 = vadd.f32 %v1261_v36, %v1149_v8  ;;  %v4699_v57 = vld [vmem:[#allocation32_spill] sm:$0xff]  ;;  %v1273_v8 = vld [vmem:[%s4388_s1 + $0x238] sm:$0xff] }
 0x261   :  { %v1374_v46 = vadd.f32 %v1262_v10, %v1150_v12  ;;  %v1375_v15 = vadd.f32 %v1263_v43, %v1151_v59  ;;  %v1376_v38 = vadd.f32 %v1264_v55, %v1152_v27  ;;  %v1482_v33 = vmax.f32 %v1370_v30, 0.0  ;;  %v1073_v55 = vpop.permute.xlu1 %1072  ;;  %v1274_v20 = vld [vmem:[%s4388_s1 + $0x240] sm:$0xff]  ;;  %v1275_v12 = vld [vmem:[%s4388_s1 + $0x248] sm:$0xff] }
 0x262   :  { %v1483_v35 = vmax.f32 %v1371_v63, 0.0  ;;  %v1484_v24 = vmax.f32 %v1372_v53, 0.0  ;;  %v1006_v54 = vmul.f32 %v1797_v39, %v3556_v23  ;;  %v1485_v18 = vmax.f32 %v1373_v56, 0.0  ;;  %v1276_v63 = vld [vmem:[%s4388_s1 + $0x250] sm:$0xff]  ;;  %v1277_v53 = vld [vmem:[%s4388_s1 + $0x258] sm:$0xff]  ;;  %v1278_v4 = vld [vmem:[%s4388_s1 + $0x260] sm:$0xff] }
 0x263   :  { %v1486_v62 = vmax.f32 %v1374_v46, 0.0  ;;  %v1487_v7 = vmax.f32 %v1375_v15, 0.0  ;;  %v1488_v11 = vmax.f32 %v1376_v38, 0.0  ;;  %1594 = vst [vmem:[%s4389_s4 + $0x1c0] sm:$0xff] %v1482_v33  ;;  %v1007_v16 = vmul.f32 %v1798_v50, %v3556_v23  ;;  %v4702_v46 = vld [vmem:[#allocation28_spill] sm:$0xff]  ;;  %v4703_v38 = vld [vmem:[#allocation31_spill] sm:$0xff] }
 0x264   :  { %1595 = vst [vmem:[%s4389_s4 + $0x1c8] sm:$0xff] %v1483_v35  ;;  %1596 = vst [vmem:[%s4389_s4 + $0x1d0] sm:$0xff] %v1484_v24  ;;  %v1008_v19 = vmul.f32 %v1799_v58, %v3556_v23  ;;  %v1009_v42 = vmul.f32 %v1800_v28, %v3556_v23  ;;  %v1195_v32 = vadd.f32 %v1088_v40, %v3578_v14  ;;  %v1311_v14 = vld [vmem:[%s4388_s1 + $0x368] sm:$0xff]  ;;  %v1312_v23 = vld [vmem:[%s4388_s1 + $0x370] sm:$0xff] }
 0x265   :  { %1597 = vst [vmem:[%s4389_s4 + $0x1d8] sm:$0xff] %v1485_v18  ;;  %1598 = vst [vmem:[%s4389_s4 + $0x1e0] sm:$0xff] %v1486_v62  ;;  %v1196_v29 = vadd.f32 %v1088_v40, %v3592_v37  ;;  %v1197_v34 = vadd.f32 %v1088_v40, %v1005_v31  ;;  %v1198_v1 = vadd.f32 %v1088_v40, %v1006_v54  ;;  %v1272_v37 = vld [vmem:[%s4388_s1 + $0x230] sm:$0xff]  ;;  %v4701_v31 = vld [vmem:[#allocation27_spill] sm:$0xff] }
 0x266   :  { %1599 = vst [vmem:[%s4389_s4 + $0x1e8] sm:$0xff] %v1487_v7  ;;  %1600 = vst.msk [vmem:[%s4389_s4 + $0x1f0] sm:$0xff] %vm134_vm0, %v1488_v11  ;;  %v1160_v25 = vadd.f32 %v4147_v48, %v4698_v17  ;;  %v1199_v3 = vadd.f32 %v1088_v40, %v1007_v16  ;;  %v1200_v45 = vadd.f32 %v1088_v40, %v1008_v19  ;;  %v4704_v33 = vld [vmem:[#allocation33_spill] sm:$0xff]  ;;  %v1286_v16 = vld [vmem:[%s4388_s1 + $0x2a0] sm:$0xff] }
 0x267   :  { %v1201_v41 = vadd.f32 %v1088_v40, %v1009_v42  ;;  %v1419_v5 = vadd.f32 %v1307_v44, %v1195_v32  ;;  %v1420_v13 = vadd.f32 %v1308_v52, %v1196_v29  ;;  %v1421_v36 = vadd.f32 %v1309_v61, %v1197_v34  ;;  %v4705_v62 = vld [vmem:[#allocation49_spill] sm:$0xff]  ;;  %v1287_v42 = vld [vmem:[%s4388_s1 + $0x2a8] sm:$0xff]  ;;  %v1288_v52 = vld [vmem:[%s4388_s1 + $0x2b0] sm:$0xff] }
 0x268   :  { %v1422_v0 = vadd.f32 %v1310_v6, %v1198_v1  ;;  %v1161_v47 = vadd.f32 %v4147_v48, %v4699_v57  ;;  %v1423_v2 = vadd.f32 %v1311_v14, %v1199_v3  ;;  %v1424_v60 = vadd.f32 %v1312_v23, %v1200_v45  ;;  %v1289_v61 = vld [vmem:[%s4388_s1 + $0x2b8] sm:$0xff]  ;;  %v1083_v14 = vpop.permute.xlu1 %1082  ;;  %v1290_v34 = vld [vmem:[%s4388_s1 + $0x2c0] sm:$0xff]  ;;  %v1291_v1 = vld [vmem:[%s4388_s1 + $0x2c8] sm:$0xff] }
 0x269   :  { %v1425_v10 = vadd.f32 %v1313_v9, %v1201_v41  ;;  %v1531_v43 = vmax.f32 %v1419_v5, 0.0  ;;  %v1532_v26 = vmax.f32 %v1420_v13, 0.0  ;;  %v1533_v22 = vmax.f32 %v1421_v36, 0.0  ;;  %v4706_v6 = vld [vmem:[#allocation45_spill] sm:$0xff]  ;;  %v1292_v17 = vld [vmem:[%s4388_s1 + $0x2d0] sm:$0xff]  ;;  %v4708_v45 = vld [vmem:[#allocation42_spill] sm:$0xff] }
 0x26a   :  { %v1534_v49 = vmax.f32 %v1422_v0, 0.0  ;;  %v1162_v59 = vadd.f32 %v4147_v48, %v4700_v21  ;;  %v1535_v51 = vmax.f32 %v1423_v2, 0.0  ;;  %v1536_v27 = vmax.f32 %v1424_v60, 0.0  ;;  %v4709_v5 = vld [vmem:[#allocation43_spill] sm:$0xff]  ;;  %v4710_v36 = vld [vmem:[#allocation54_spill] sm:$0xff] }
 0x26b   :  { %v1537_v30 = vmax.f32 %v1425_v10, 0.0  ;;  %1643 = vst [vmem:[%s4389_s4 + $0x348] sm:$0xff] %v1531_v43  ;;  %v1163_v56 = vadd.f32 %v4147_v48, %v4701_v31  ;;  %1644 = vst [vmem:[%s4389_s4 + $0x350] sm:$0xff] %v1532_v26  ;;  %v1164_v15 = vadd.f32 %v4147_v48, %v4702_v46  ;;  %v1165_v40 = vadd.f32 %v4147_v48, %v4703_v38  ;;  %v4711_v57 = vld [vmem:[#allocation47_spill] sm:$0xff]  ;;  %v4712_v43 = vld [vmem:[#allocation53_spill] sm:$0xff] }
 0x26c   :  { %1645 = vst [vmem:[%s4389_s4 + $0x358] sm:$0xff] %v1533_v22  ;;  %1646 = vst [vmem:[%s4389_s4 + $0x360] sm:$0xff] %v1534_v49  ;;  %v1166_v35 = vadd.f32 %v4147_v48, %v4704_v33  ;;  %v1384_v24 = vadd.f32 %v1272_v37, %v1160_v25  ;;  %v1385_v39 = vadd.f32 %v1273_v8, %v1161_v47  ;;  %v4707_v25 = vld [vmem:[#allocation41_spill] sm:$0xff]  ;;  %v1300_v8 = vld [vmem:[%s4388_s1 + $0x310] sm:$0xff] }
 0x26d   :  { %1647 = vst [vmem:[%s4389_s4 + $0x368] sm:$0xff] %v1535_v51  ;;  %1648 = vst [vmem:[%s4389_s4 + $0x370] sm:$0xff] %v1536_v27  ;;  %v1386_v54 = vadd.f32 %v1274_v20, %v1162_v59  ;;  %v1387_v18 = vadd.f32 %v1275_v12, %v1163_v56  ;;  %v1174_v7 = vadd.f32 %v1073_v55, %v4705_v62  ;;  %v1301_v59 = vld [vmem:[%s4388_s1 + $0x318] sm:$0xff]  ;;  %v1302_v51 = vld [vmem:[%s4388_s1 + $0x320] sm:$0xff] }
 0x26e   :  { %1649 = vst.msk [vmem:[%s4389_s4 + $0x378] sm:$0xff] %vm134_vm0, %v1537_v30  ;;  %v1388_v48 = vadd.f32 %v1276_v63, %v1164_v15  ;;  %v1389_v11 = vadd.f32 %v1277_v53, %v1165_v40  ;;  %v1390_v44 = vadd.f32 %v1278_v4, %v1166_v35  ;;  %v1496_v50 = vmax.f32 %v1384_v24, 0.0  ;;  %v1303_v27 = vld [vmem:[%s4388_s1 + $0x328] sm:$0xff]  ;;  %v1304_v46 = vld [vmem:[%s4388_s1 + $0x330] sm:$0xff]  ;;  %v1305_v15 = vld [vmem:[%s4388_s1 + $0x338] sm:$0xff] }
 0x26f   :  { %v1497_v58 = vmax.f32 %v1385_v39, 0.0  ;;  %v1498_v19 = vmax.f32 %v1386_v54, 0.0  ;;  %v1499_v28 = vmax.f32 %v1387_v18, 0.0  ;;  %v1175_v32 = vadd.f32 %v1073_v55, %v4706_v6  ;;  %v4713_v30 = vld [vmem:[#allocation55_spill] sm:$0xff]  ;;  %v1306_v38 = vld [vmem:[%s4388_s1 + $0x340] sm:$0xff]  ;;  %v4714_v40 = vld [vmem:[#allocation56_spill] sm:$0xff] }
 0x270   :  { %v1500_v23 = vmax.f32 %v1388_v48, 0.0  ;;  %v1501_v9 = vmax.f32 %v1389_v11, 0.0  ;;  %v1502_v29 = vmax.f32 %v1390_v44, 0.0  ;;  %1608 = vst [vmem:[%s4389_s4 + $0x230] sm:$0xff] %v1496_v50  ;;  %v1176_v3 = vadd.f32 %v1073_v55, %v4707_v25  ;;  %v4715_v35 = vld [vmem:[#allocation58_spill] sm:$0xff]  ;;  %v4716_v39 = vld [vmem:[#allocation63_spill] sm:$0xff] }
 0x271   :  { %1609 = vst [vmem:[%s4389_s4 + $0x238] sm:$0xff] %v1497_v58  ;;  %1610 = vst [vmem:[%s4389_s4 + $0x240] sm:$0xff] %v1498_v19  ;;  %v1177_v41 = vadd.f32 %v1073_v55, %v4708_v45  ;;  %v1178_v13 = vadd.f32 %v1073_v55, %v4709_v5  ;;  %v1179_v0 = vadd.f32 %v1073_v55, %v4710_v36  ;;  %v4717_v18 = vld [vmem:[#allocation65_spill] sm:$0xff] }
 0x272   :  { %1611 = vst [vmem:[%s4389_s4 + $0x248] sm:$0xff] %v1499_v28  ;;  %v1180_v47 = vadd.f32 %v1073_v55, %v4711_v57  ;;  %1612 = vst [vmem:[%s4389_s4 + $0x250] sm:$0xff] %v1500_v23  ;;  %v1398_v2 = vadd.f32 %v1286_v16, %v1174_v7  ;;  %v1399_v60 = vadd.f32 %v1287_v42, %v1175_v32  ;;  %v4718_v7 = vld [vmem:[#allocation66_spill] sm:$0xff] }
 0x273   :  { %1613 = vst [vmem:[%s4389_s4 + $0x258] sm:$0xff] %v1501_v9  ;;  %1614 = vst.msk [vmem:[%s4389_s4 + $0x260] sm:$0xff] %vm134_vm0, %v1502_v29  ;;  %v1400_v10 = vadd.f32 %v1288_v52, %v1176_v3  ;;  %v1188_v37 = vadd.f32 %v1083_v14, %v4712_v43  ;;  %v1401_v26 = vadd.f32 %v1289_v61, %v1177_v41 }
 0x274   :  { %v1402_v55 = vadd.f32 %v1290_v34, %v1178_v13  ;;  %v1403_v22 = vadd.f32 %v1291_v1, %v1179_v0  ;;  %v1404_v49 = vadd.f32 %v1292_v17, %v1180_v47  ;;  %v1510_v20 = vmax.f32 %v1398_v2, 0.0 }
 0x275   :  { %v1511_v12 = vmax.f32 %v1399_v60, 0.0  ;;  %v1512_v21 = vmax.f32 %v1400_v10, 0.0  ;;  %v1189_v63 = vadd.f32 %v1083_v14, %v4713_v30  ;;  %v1513_v53 = vmax.f32 %v1401_v26, 0.0 }
 0x276   :  { %v1514_v4 = vmax.f32 %v1402_v55, 0.0  ;;  %v1515_v31 = vmax.f32 %v1403_v22, 0.0  ;;  %v1516_v56 = vmax.f32 %v1404_v49, 0.0  ;;  %1622 = vst [vmem:[%s4389_s4 + $0x2a0] sm:$0xff] %v1510_v20  ;;  %v1190_v33 = vadd.f32 %v1083_v14, %v4714_v40 }
 0x277   :  { %1623 = vst [vmem:[%s4389_s4 + $0x2a8] sm:$0xff] %v1511_v12  ;;  %1624 = vst [vmem:[%s4389_s4 + $0x2b0] sm:$0xff] %v1512_v21  ;;  %v1191_v24 = vadd.f32 %v1083_v14, %v4715_v35  ;;  %v1192_v54 = vadd.f32 %v1083_v14, %v4716_v39  ;;  %v1193_v62 = vadd.f32 %v1083_v14, %v4717_v18 }
 0x278   :  { %1625 = vst [vmem:[%s4389_s4 + $0x2b8] sm:$0xff] %v1513_v53  ;;  %1626 = vst [vmem:[%s4389_s4 + $0x2c0] sm:$0xff] %v1514_v4  ;;  %v1194_v48 = vadd.f32 %v1083_v14, %v4718_v7  ;;  %v1412_v11 = vadd.f32 %v1300_v8, %v1188_v37  ;;  %v1413_v44 = vadd.f32 %v1301_v59, %v1189_v63 }
 0x279   :  { %1627 = vst [vmem:[%s4389_s4 + $0x2c8] sm:$0xff] %v1515_v31  ;;  %1628 = vst.msk [vmem:[%s4389_s4 + $0x2d0] sm:$0xff] %vm134_vm0, %v1516_v56  ;;  %v1414_v50 = vadd.f32 %v1302_v51, %v1190_v33  ;;  %v1415_v16 = vadd.f32 %v1303_v27, %v1191_v24  ;;  %v1416_v58 = vadd.f32 %v1304_v46, %v1192_v54 }
 0x27a   :  { %v1417_v19 = vadd.f32 %v1305_v15, %v1193_v62  ;;  %v1418_v28 = vadd.f32 %v1306_v38, %v1194_v48  ;;  %v1524_v42 = vmax.f32 %v1412_v11, 0.0  ;;  %v1525_v52 = vmax.f32 %v1413_v44, 0.0 }
 0x27b   :  { %v1526_v61 = vmax.f32 %v1414_v50, 0.0  ;;  %v1527_v6 = vmax.f32 %v1415_v16, 0.0  ;;  %v1528_v32 = vmax.f32 %v1416_v58, 0.0 }
 0x27c   :  { %v1529_v23 = vmax.f32 %v1417_v19, 0.0  ;;  %v1530_v9 = vmax.f32 %v1418_v28, 0.0  ;;  %1636 = vst [vmem:[%s4389_s4 + $0x310] sm:$0xff] %v1524_v42  ;;  %1637 = vst [vmem:[%s4389_s4 + $0x318] sm:$0xff] %v1525_v52 }
 0x27d   :  { %1638 = vst [vmem:[%s4389_s4 + $0x320] sm:$0xff] %v1526_v61  ;;  %1639 = vst [vmem:[%s4389_s4 + $0x328] sm:$0xff] %v1527_v6 }
 0x27e   :  { %1640 = vst [vmem:[%s4389_s4 + $0x330] sm:$0xff] %v1528_v32  ;;  %1641 = vst [vmem:[%s4389_s4 + $0x338] sm:$0xff] %v1529_v23 }
 0x27f   :  { %1642 = vst.msk [vmem:[%s4389_s4 + $0x340] sm:$0xff] %vm134_vm0, %v1530_v9 }

</bundles_post_ra>
